<compile_context>
chip_gen: v7x
topology: tpu7x:2x2x1
jax: 0.10.0
libtpu: 0.0.40
codegen_flags: <defaults>
</compile_context>

<pallas_src>
import functools

import jax
import jax.numpy as jnp
from jax.experimental import pallas as pl
from jax.experimental.pallas import tpu as pltpu


# ---------------------------------------------------------------------------
# Fused kernel: backbone (conv-as-matmul + ReLU) for both streams + head.
# ---------------------------------------------------------------------------
def _fused_kernel(p0_ref, p1_ref, wm_ref, cb_ref, hw0_ref, hw1_ref, hb_ref,
                  o_ref, *, n_batch, c_out):
    # p*_ref : (N, KKC, HW)   im2col patches of x0 / x1 (lane axis = HW)
    # wm_ref : (Cout, KKC)    conv weight, columns ordered (dy, dx, cin)
    # cb_ref : (Cout, 1)      conv bias
    # hw*_ref: (Cout, HW, 6)  head weight slabs per (stream, conv channel)
    # hb_ref : (1, 6)         head bias
    # o_ref  : (N, 6)
    for n in range(n_batch):                                   # tiny, static unroll
        y_n = hb_ref[...]                                      # (1, 6)
        for p_ref, hw_ref in ((p0_ref, hw0_ref), (p1_ref, hw1_ref)):
            # Backbone conv: (Cout, KKC) @ (KKC, HW) -> lane-dense (Cout, HW),
            # which is already the NCHW-flattened feature layout.
            conv = jnp.dot(wm_ref[...], p_ref[n],
                           preferred_element_type=jnp.float32)
            conv = jnp.maximum(conv + cb_ref[...], 0.0)        # bias + ReLU
            # Head (Dropout2d is identity in eval): accumulate
            # y[n] += conv[c, :] @ W_slab[stream, c]  for every conv channel.
            for c in range(c_out):
                y_n = y_n + jnp.dot(conv[c:c + 1, :], hw_ref[c],
                                    preferred_element_type=jnp.float32)
        o_ref[pl.ds(n, 1), :] = y_n


# ---------------------------------------------------------------------------
# JAX-side glue (weight re-layouts are static; im2col built lane-dense).
# ---------------------------------------------------------------------------
def _im2col_khw(x_nchw, kernel_size, pad):
    """(N, C, H, W) -> (N, K*K*C, H*W); rows tap-major / channel-minor,
    H*W kept as the minor (lane) axis."""
    n, c, h, w = x_nchw.shape
    xp = jnp.pad(x_nchw, ((0, 0), (0, 0), (pad, pad), (pad, pad)))
    taps = [xp[:, :, dy:dy + h, dx:dx + w].reshape(n, c, h * w)
            for dy in range(kernel_size) for dx in range(kernel_size)]
    return jnp.concatenate(taps, axis=1)


def segmentator_forward(x0, x1, params):
    """Matches Segmentator.forward: head(flatten(cat(bb(x0), bb(x1), dim=1)))."""
    conv_w, conv_b = params["conv_w"], params["conv_b"]
    lin_w, lin_b = params["lin_w"], params["lin_b"]

    n_batch, c_in, h, w = x0.shape
    c_out, _, k, _ = conv_w.shape
    hw, kkc = h * w, k * k * c_in
    n_cls = lin_w.shape[0]                                     # 6

    # Static weight plumbing (no math, folded by XLA at trace time):
    #  * conv weight columns ordered (dy, dx, cin) to match the patch rows.
    #  * Linear weight re-laid-out so that feature index
    #      f = stream*Cout*HW + c*HW + hw   (== torch.cat(dim=1).view(N,-1))
    #    becomes per-(stream, channel) (HW, 6) slabs -> no cat/flatten at runtime.
    wm = conv_w.transpose(0, 2, 3, 1).reshape(c_out, kkc)      # (Cout, KKC)
    cb = conv_b.reshape(c_out, 1)                              # (Cout, 1)
    hw_all = lin_w.T.reshape(2, c_out, hw, n_cls)              # (2, Cout, HW, 6)
    hb = lin_b.reshape(1, n_cls)                               # (1, 6)

    # im2col directly in (N, KKC, HW) layout (review's accepted alternative).
    p0 = _im2col_khw(x0, k, k // 2)
    p1 = _im2col_khw(x1, k, k // 2)

    kernel = functools.partial(_fused_kernel, n_batch=n_batch, c_out=c_out)
    vmem = lambda: pl.BlockSpec(memory_space=pltpu.MemorySpace.VMEM)
    return pl.pallas_call(
        kernel,
        out_shape=jax.ShapeDtypeStruct((n_batch, n_cls), jnp.float32),
        in_specs=[vmem() for _ in range(7)],
        out_specs=vmem(),
    )(p0, p1, wm, cb, hw_all[0], hw_all[1], hb)


# ---------------------------------------------------------------------------
# Pure-JAX reference (for a correctness spot-check).
# ---------------------------------------------------------------------------
def _reference_forward(x0, x1, params):
    def backbone(x):
        y = jax.lax.conv_general_dilated(
            x, params["conv_w"], window_strides=(1, 1), padding="SAME",
            dimension_numbers=("NCHW", "OIHW", "NCHW"))
        return jax.nn.relu(y + params["conv_b"][None, :, None, None])

    y = jnp.concatenate((backbone(x0), backbone(x1)), axis=1)  # cat on channel
    y = y.reshape(y.shape[0], -1)                              # .view(N, -1)
    return y @ params["lin_w"].T + params["lin_b"]


# ---------------------------------------------------------------------------
# Deterministic example run.
# ---------------------------------------------------------------------------
if __name__ == "__main__":
    N, Cin, H, W = 2, 5, 16, 16       # small range-image-like input (NCHW)
    Cout, K = 4, 3                    # synthetic backbone output depth
    F = 2 * Cout * H * W              # head in_features = cat(y0, y1) flattened

    key = jax.random.PRNGKey(0)
    k0, k1, k2, k3, k4, k5 = jax.random.split(key, 6)

    params = {
        "conv_w": 0.1 * jax.random.normal(k0, (Cout, Cin, K, K), jnp.float32),
        "conv_b": 0.1 * jax.random.normal(k1, (Cout,), jnp.float32),
        "lin_w":  0.02 * jax.random.normal(k2, (6, F), jnp.float32),
        "lin_b":  0.02 * jax.random.normal(k3, (6,), jnp.float32),
    }

    x0 = jax.random.normal(k4, (N, Cin, H, W), jnp.float32)
    x1 = jax.random.normal(k5, (N, Cin, H, W), jnp.float32)

    y = jax.jit(segmentator_forward)(x0, x1, params)
    y = jax.block_until_ready(y)
    assert y.shape == (N, 6) and y.dtype == jnp.float32

    y_ref = jax.jit(_reference_forward)(x0, x1, params)
    assert jnp.allclose(y, y_ref, atol=1e-3, rtol=1e-3), "mismatch vs reference"

    print("KERNEL_OK")
</pallas_src>

<mosaic_0001>
module attributes {stable_mosaic.version = 11 : i64} {
  func.func @_fused_kernel(%arg0: memref<2x45x256xf32, #tpu.memory_space<vmem>>, %arg1: memref<2x45x256xf32, #tpu.memory_space<vmem>>, %arg2: memref<4x45xf32, #tpu.memory_space<vmem>>, %arg3: memref<4x1xf32, #tpu.memory_space<vmem>>, %arg4: memref<4x256x6xf32, #tpu.memory_space<vmem>>, %arg5: memref<4x256x6xf32, #tpu.memory_space<vmem>>, %arg6: memref<1x6xf32, #tpu.memory_space<vmem>>, %arg7: memref<2x6xf32, #tpu.memory_space<vmem>>) attributes {dimension_semantics = [], scalar_prefetch = 0 : i64, scratch_operands = 0 : i64, tpu.core_type = #tpu.core_type<tc>} {
    %c0 = arith.constant 0 : index
    %c0_0 = arith.constant 0 : index
    %0 = vector.load %arg6[%c0, %c0_0] : memref<1x6xf32, #tpu.memory_space<vmem>>, vector<1x6xf32>
    %c0_1 = arith.constant 0 : index
    %c0_2 = arith.constant 0 : index
    %1 = vector.load %arg2[%c0_1, %c0_2] : memref<4x45xf32, #tpu.memory_space<vmem>>, vector<4x45xf32>
    %c0_3 = arith.constant 0 : index
    %c0_4 = arith.constant 0 : index
    %c0_5 = arith.constant 0 : index
    %2 = vector.load %arg0[%c0_3, %c0_4, %c0_5] : memref<2x45x256xf32, #tpu.memory_space<vmem>>, vector<1x45x256xf32>
    %3 = vector.shape_cast %2 : vector<1x45x256xf32> to vector<45x256xf32>
    %cst = arith.constant dense<0.000000e+00> : vector<4x256xf32>
    %4 = tpu.matmul %1, %3, %cst {dimension_numbers = #tpu.dot_dimension_numbers<[1], [0], [0], [1], [0, 0, 1, 1], [], []>} : vector<4x45xf32>, vector<45x256xf32>, vector<4x256xf32> -> vector<4x256xf32>
    %c0_6 = arith.constant 0 : index
    %c0_7 = arith.constant 0 : index
    %5 = vector.load %arg3[%c0_6, %c0_7] : memref<4x1xf32, #tpu.memory_space<vmem>>, vector<4x1xf32>
    %6 = vector.broadcast %5 : vector<4x1xf32> to vector<4x256xf32>
    %7 = arith.addf %4, %6 : vector<4x256xf32>
    %cst_8 = arith.constant 0.000000e+00 : f32
    %8 = vector.broadcast %cst_8 : f32 to vector<4x256xf32>
    %9 = arith.maximumf %7, %8 : vector<4x256xf32>
    %10 = vector.extract_strided_slice %9 {offsets = [0, 0], sizes = [1, 256], strides = [1, 1]} : vector<4x256xf32> to vector<1x256xf32>
    %c0_9 = arith.constant 0 : index
    %c0_10 = arith.constant 0 : index
    %c0_11 = arith.constant 0 : index
    %11 = vector.load %arg4[%c0_9, %c0_10, %c0_11] : memref<4x256x6xf32, #tpu.memory_space<vmem>>, vector<1x256x6xf32>
    %12 = vector.shape_cast %11 : vector<1x256x6xf32> to vector<256x6xf32>
    %cst_12 = arith.constant dense<0.000000e+00> : vector<1x6xf32>
    %13 = tpu.matmul %10, %12, %cst_12 {dimension_numbers = #tpu.dot_dimension_numbers<[1], [0], [0], [1], [0, 0, 1, 1], [], []>} : vector<1x256xf32>, vector<256x6xf32>, vector<1x6xf32> -> vector<1x6xf32>
    %14 = arith.addf %0, %13 : vector<1x6xf32>
    %15 = vector.extract_strided_slice %9 {offsets = [1, 0], sizes = [1, 256], strides = [1, 1]} : vector<4x256xf32> to vector<1x256xf32>
    %c1 = arith.constant 1 : index
    %c0_13 = arith.constant 0 : index
    %c0_14 = arith.constant 0 : index
    %16 = vector.load %arg4[%c1, %c0_13, %c0_14] : memref<4x256x6xf32, #tpu.memory_space<vmem>>, vector<1x256x6xf32>
    %17 = vector.shape_cast %16 : vector<1x256x6xf32> to vector<256x6xf32>
    %cst_15 = arith.constant dense<0.000000e+00> : vector<1x6xf32>
    %18 = tpu.matmul %15, %17, %cst_15 {dimension_numbers = #tpu.dot_dimension_numbers<[1], [0], [0], [1], [0, 0, 1, 1], [], []>} : vector<1x256xf32>, vector<256x6xf32>, vector<1x6xf32> -> vector<1x6xf32>
    %19 = arith.addf %14, %18 : vector<1x6xf32>
    %20 = vector.extract_strided_slice %9 {offsets = [2, 0], sizes = [1, 256], strides = [1, 1]} : vector<4x256xf32> to vector<1x256xf32>
    %c2 = arith.constant 2 : index
    %c0_16 = arith.constant 0 : index
    %c0_17 = arith.constant 0 : index
    %21 = vector.load %arg4[%c2, %c0_16, %c0_17] : memref<4x256x6xf32, #tpu.memory_space<vmem>>, vector<1x256x6xf32>
    %22 = vector.shape_cast %21 : vector<1x256x6xf32> to vector<256x6xf32>
    %cst_18 = arith.constant dense<0.000000e+00> : vector<1x6xf32>
    %23 = tpu.matmul %20, %22, %cst_18 {dimension_numbers = #tpu.dot_dimension_numbers<[1], [0], [0], [1], [0, 0, 1, 1], [], []>} : vector<1x256xf32>, vector<256x6xf32>, vector<1x6xf32> -> vector<1x6xf32>
    %24 = arith.addf %19, %23 : vector<1x6xf32>
    %25 = vector.extract_strided_slice %9 {offsets = [3, 0], sizes = [1, 256], strides = [1, 1]} : vector<4x256xf32> to vector<1x256xf32>
    %c3 = arith.constant 3 : index
    %c0_19 = arith.constant 0 : index
    %c0_20 = arith.constant 0 : index
    %26 = vector.load %arg4[%c3, %c0_19, %c0_20] : memref<4x256x6xf32, #tpu.memory_space<vmem>>, vector<1x256x6xf32>
    %27 = vector.shape_cast %26 : vector<1x256x6xf32> to vector<256x6xf32>
    %cst_21 = arith.constant dense<0.000000e+00> : vector<1x6xf32>
    %28 = tpu.matmul %25, %27, %cst_21 {dimension_numbers = #tpu.dot_dimension_numbers<[1], [0], [0], [1], [0, 0, 1, 1], [], []>} : vector<1x256xf32>, vector<256x6xf32>, vector<1x6xf32> -> vector<1x6xf32>
    %29 = arith.addf %24, %28 : vector<1x6xf32>
    %c0_22 = arith.constant 0 : index
    %c0_23 = arith.constant 0 : index
    %30 = vector.load %arg2[%c0_22, %c0_23] : memref<4x45xf32, #tpu.memory_space<vmem>>, vector<4x45xf32>
    %c0_24 = arith.constant 0 : index
    %c0_25 = arith.constant 0 : index
    %c0_26 = arith.constant 0 : index
    %31 = vector.load %arg1[%c0_24, %c0_25, %c0_26] : memref<2x45x256xf32, #tpu.memory_space<vmem>>, vector<1x45x256xf32>
    %32 = vector.shape_cast %31 : vector<1x45x256xf32> to vector<45x256xf32>
    %cst_27 = arith.constant dense<0.000000e+00> : vector<4x256xf32>
    %33 = tpu.matmul %30, %32, %cst_27 {dimension_numbers = #tpu.dot_dimension_numbers<[1], [0], [0], [1], [0, 0, 1, 1], [], []>} : vector<4x45xf32>, vector<45x256xf32>, vector<4x256xf32> -> vector<4x256xf32>
    %c0_28 = arith.constant 0 : index
    %c0_29 = arith.constant 0 : index
    %34 = vector.load %arg3[%c0_28, %c0_29] : memref<4x1xf32, #tpu.memory_space<vmem>>, vector<4x1xf32>
    %35 = vector.broadcast %34 : vector<4x1xf32> to vector<4x256xf32>
    %36 = arith.addf %33, %35 : vector<4x256xf32>
    %cst_30 = arith.constant 0.000000e+00 : f32
    %37 = vector.broadcast %cst_30 : f32 to vector<4x256xf32>
    %38 = arith.maximumf %36, %37 : vector<4x256xf32>
    %39 = vector.extract_strided_slice %38 {offsets = [0, 0], sizes = [1, 256], strides = [1, 1]} : vector<4x256xf32> to vector<1x256xf32>
    %c0_31 = arith.constant 0 : index
    %c0_32 = arith.constant 0 : index
    %c0_33 = arith.constant 0 : index
    %40 = vector.load %arg5[%c0_31, %c0_32, %c0_33] : memref<4x256x6xf32, #tpu.memory_space<vmem>>, vector<1x256x6xf32>
    %41 = vector.shape_cast %40 : vector<1x256x6xf32> to vector<256x6xf32>
    %cst_34 = arith.constant dense<0.000000e+00> : vector<1x6xf32>
    %42 = tpu.matmul %39, %41, %cst_34 {dimension_numbers = #tpu.dot_dimension_numbers<[1], [0], [0], [1], [0, 0, 1, 1], [], []>} : vector<1x256xf32>, vector<256x6xf32>, vector<1x6xf32> -> vector<1x6xf32>
    %43 = arith.addf %29, %42 : vector<1x6xf32>
    %44 = vector.extract_strided_slice %38 {offsets = [1, 0], sizes = [1, 256], strides = [1, 1]} : vector<4x256xf32> to vector<1x256xf32>
    %c1_35 = arith.constant 1 : index
    %c0_36 = arith.constant 0 : index
    %c0_37 = arith.constant 0 : index
    %45 = vector.load %arg5[%c1_35, %c0_36, %c0_37] : memref<4x256x6xf32, #tpu.memory_space<vmem>>, vector<1x256x6xf32>
    %46 = vector.shape_cast %45 : vector<1x256x6xf32> to vector<256x6xf32>
    %cst_38 = arith.constant dense<0.000000e+00> : vector<1x6xf32>
    %47 = tpu.matmul %44, %46, %cst_38 {dimension_numbers = #tpu.dot_dimension_numbers<[1], [0], [0], [1], [0, 0, 1, 1], [], []>} : vector<1x256xf32>, vector<256x6xf32>, vector<1x6xf32> -> vector<1x6xf32>
    %48 = arith.addf %43, %47 : vector<1x6xf32>
    %49 = vector.extract_strided_slice %38 {offsets = [2, 0], sizes = [1, 256], strides = [1, 1]} : vector<4x256xf32> to vector<1x256xf32>
    %c2_39 = arith.constant 2 : index
    %c0_40 = arith.constant 0 : index
    %c0_41 = arith.constant 0 : index
    %50 = vector.load %arg5[%c2_39, %c0_40, %c0_41] : memref<4x256x6xf32, #tpu.memory_space<vmem>>, vector<1x256x6xf32>
    %51 = vector.shape_cast %50 : vector<1x256x6xf32> to vector<256x6xf32>
    %cst_42 = arith.constant dense<0.000000e+00> : vector<1x6xf32>
    %52 = tpu.matmul %49, %51, %cst_42 {dimension_numbers = #tpu.dot_dimension_numbers<[1], [0], [0], [1], [0, 0, 1, 1], [], []>} : vector<1x256xf32>, vector<256x6xf32>, vector<1x6xf32> -> vector<1x6xf32>
    %53 = arith.addf %48, %52 : vector<1x6xf32>
    %54 = vector.extract_strided_slice %38 {offsets = [3, 0], sizes = [1, 256], strides = [1, 1]} : vector<4x256xf32> to vector<1x256xf32>
    %c3_43 = arith.constant 3 : index
    %c0_44 = arith.constant 0 : index
    %c0_45 = arith.constant 0 : index
    %55 = vector.load %arg5[%c3_43, %c0_44, %c0_45] : memref<4x256x6xf32, #tpu.memory_space<vmem>>, vector<1x256x6xf32>
    %56 = vector.shape_cast %55 : vector<1x256x6xf32> to vector<256x6xf32>
    %cst_46 = arith.constant dense<0.000000e+00> : vector<1x6xf32>
    %57 = tpu.matmul %54, %56, %cst_46 {dimension_numbers = #tpu.dot_dimension_numbers<[1], [0], [0], [1], [0, 0, 1, 1], [], []>} : vector<1x256xf32>, vector<256x6xf32>, vector<1x6xf32> -> vector<1x6xf32>
    %58 = arith.addf %53, %57 : vector<1x6xf32>
    %c0_47 = arith.constant 0 : index
    %c0_48 = arith.constant 0 : index
    %59 = vector.load %arg7[%c0_47, %c0_48] : memref<2x6xf32, #tpu.memory_space<vmem>>, vector<1x6xf32>
    tpu.vector_store %arg7[%c0_47, %c0_48], %58 {strides = array<i32>} : memref<2x6xf32, #tpu.memory_space<vmem>>, vector<1x6xf32>,
    %c0_49 = arith.constant 0 : index
    %c0_50 = arith.constant 0 : index
    %60 = vector.load %arg6[%c0_49, %c0_50] : memref<1x6xf32, #tpu.memory_space<vmem>>, vector<1x6xf32>
    %c0_51 = arith.constant 0 : index
    %c0_52 = arith.constant 0 : index
    %61 = vector.load %arg2[%c0_51, %c0_52] : memref<4x45xf32, #tpu.memory_space<vmem>>, vector<4x45xf32>
    %c1_53 = arith.constant 1 : index
    %c0_54 = arith.constant 0 : index
    %c0_55 = arith.constant 0 : index
    %62 = vector.load %arg0[%c1_53, %c0_54, %c0_55] : memref<2x45x256xf32, #tpu.memory_space<vmem>>, vector<1x45x256xf32>
    %63 = vector.shape_cast %62 : vector<1x45x256xf32> to vector<45x256xf32>
    %cst_56 = arith.constant dense<0.000000e+00> : vector<4x256xf32>
    %64 = tpu.matmul %61, %63, %cst_56 {dimension_numbers = #tpu.dot_dimension_numbers<[1], [0], [0], [1], [0, 0, 1, 1], [], []>} : vector<4x45xf32>, vector<45x256xf32>, vector<4x256xf32> -> vector<4x256xf32>
    %c0_57 = arith.constant 0 : index
    %c0_58 = arith.constant 0 : index
    %65 = vector.load %arg3[%c0_57, %c0_58] : memref<4x1xf32, #tpu.memory_space<vmem>>, vector<4x1xf32>
    %66 = vector.broadcast %65 : vector<4x1xf32> to vector<4x256xf32>
    %67 = arith.addf %64, %66 : vector<4x256xf32>
    %cst_59 = arith.constant 0.000000e+00 : f32
    %68 = vector.broadcast %cst_59 : f32 to vector<4x256xf32>
    %69 = arith.maximumf %67, %68 : vector<4x256xf32>
    %70 = vector.extract_strided_slice %69 {offsets = [0, 0], sizes = [1, 256], strides = [1, 1]} : vector<4x256xf32> to vector<1x256xf32>
    %c0_60 = arith.constant 0 : index
    %c0_61 = arith.constant 0 : index
    %c0_62 = arith.constant 0 : index
    %71 = vector.load %arg4[%c0_60, %c0_61, %c0_62] : memref<4x256x6xf32, #tpu.memory_space<vmem>>, vector<1x256x6xf32>
    %72 = vector.shape_cast %71 : vector<1x256x6xf32> to vector<256x6xf32>
    %cst_63 = arith.constant dense<0.000000e+00> : vector<1x6xf32>
    %73 = tpu.matmul %70, %72, %cst_63 {dimension_numbers = #tpu.dot_dimension_numbers<[1], [0], [0], [1], [0, 0, 1, 1], [], []>} : vector<1x256xf32>, vector<256x6xf32>, vector<1x6xf32> -> vector<1x6xf32>
    %74 = arith.addf %60, %73 : vector<1x6xf32>
    %75 = vector.extract_strided_slice %69 {offsets = [1, 0], sizes = [1, 256], strides = [1, 1]} : vector<4x256xf32> to vector<1x256xf32>
    %c1_64 = arith.constant 1 : index
    %c0_65 = arith.constant 0 : index
    %c0_66 = arith.constant 0 : index
    %76 = vector.load %arg4[%c1_64, %c0_65, %c0_66] : memref<4x256x6xf32, #tpu.memory_space<vmem>>, vector<1x256x6xf32>
    %77 = vector.shape_cast %76 : vector<1x256x6xf32> to vector<256x6xf32>
    %cst_67 = arith.constant dense<0.000000e+00> : vector<1x6xf32>
    %78 = tpu.matmul %75, %77, %cst_67 {dimension_numbers = #tpu.dot_dimension_numbers<[1], [0], [0], [1], [0, 0, 1, 1], [], []>} : vector<1x256xf32>, vector<256x6xf32>, vector<1x6xf32> -> vector<1x6xf32>
    %79 = arith.addf %74, %78 : vector<1x6xf32>
    %80 = vector.extract_strided_slice %69 {offsets = [2, 0], sizes = [1, 256], strides = [1, 1]} : vector<4x256xf32> to vector<1x256xf32>
    %c2_68 = arith.constant 2 : index
    %c0_69 = arith.constant 0 : index
    %c0_70 = arith.constant 0 : index
    %81 = vector.load %arg4[%c2_68, %c0_69, %c0_70] : memref<4x256x6xf32, #tpu.memory_space<vmem>>, vector<1x256x6xf32>
    %82 = vector.shape_cast %81 : vector<1x256x6xf32> to vector<256x6xf32>
    %cst_71 = arith.constant dense<0.000000e+00> : vector<1x6xf32>
    %83 = tpu.matmul %80, %82, %cst_71 {dimension_numbers = #tpu.dot_dimension_numbers<[1], [0], [0], [1], [0, 0, 1, 1], [], []>} : vector<1x256xf32>, vector<256x6xf32>, vector<1x6xf32> -> vector<1x6xf32>
    %84 = arith.addf %79, %83 : vector<1x6xf32>
    %85 = vector.extract_strided_slice %69 {offsets = [3, 0], sizes = [1, 256], strides = [1, 1]} : vector<4x256xf32> to vector<1x256xf32>
    %c3_72 = arith.constant 3 : index
    %c0_73 = arith.constant 0 : index
    %c0_74 = arith.constant 0 : index
    %86 = vector.load %arg4[%c3_72, %c0_73, %c0_74] : memref<4x256x6xf32, #tpu.memory_space<vmem>>, vector<1x256x6xf32>
    %87 = vector.shape_cast %86 : vector<1x256x6xf32> to vector<256x6xf32>
    %cst_75 = arith.constant dense<0.000000e+00> : vector<1x6xf32>
    %88 = tpu.matmul %85, %87, %cst_75 {dimension_numbers = #tpu.dot_dimension_numbers<[1], [0], [0], [1], [0, 0, 1, 1], [], []>} : vector<1x256xf32>, vector<256x6xf32>, vector<1x6xf32> -> vector<1x6xf32>
    %89 = arith.addf %84, %88 : vector<1x6xf32>
    %c0_76 = arith.constant 0 : index
    %c0_77 = arith.constant 0 : index
    %90 = vector.load %arg2[%c0_76, %c0_77] : memref<4x45xf32, #tpu.memory_space<vmem>>, vector<4x45xf32>
    %c1_78 = arith.constant 1 : index
    %c0_79 = arith.constant 0 : index
    %c0_80 = arith.constant 0 : index
    %91 = vector.load %arg1[%c1_78, %c0_79, %c0_80] : memref<2x45x256xf32, #tpu.memory_space<vmem>>, vector<1x45x256xf32>
    %92 = vector.shape_cast %91 : vector<1x45x256xf32> to vector<45x256xf32>
    %cst_81 = arith.constant dense<0.000000e+00> : vector<4x256xf32>
    %93 = tpu.matmul %90, %92, %cst_81 {dimension_numbers = #tpu.dot_dimension_numbers<[1], [0], [0], [1], [0, 0, 1, 1], [], []>} : vector<4x45xf32>, vector<45x256xf32>, vector<4x256xf32> -> vector<4x256xf32>
    %c0_82 = arith.constant 0 : index
    %c0_83 = arith.constant 0 : index
    %94 = vector.load %arg3[%c0_82, %c0_83] : memref<4x1xf32, #tpu.memory_space<vmem>>, vector<4x1xf32>
    %95 = vector.broadcast %94 : vector<4x1xf32> to vector<4x256xf32>
    %96 = arith.addf %93, %95 : vector<4x256xf32>
    %cst_84 = arith.constant 0.000000e+00 : f32
    %97 = vector.broadcast %cst_84 : f32 to vector<4x256xf32>
    %98 = arith.maximumf %96, %97 : vector<4x256xf32>
    %99 = vector.extract_strided_slice %98 {offsets = [0, 0], sizes = [1, 256], strides = [1, 1]} : vector<4x256xf32> to vector<1x256xf32>
    %c0_85 = arith.constant 0 : index
    %c0_86 = arith.constant 0 : index
    %c0_87 = arith.constant 0 : index
    %100 = vector.load %arg5[%c0_85, %c0_86, %c0_87] : memref<4x256x6xf32, #tpu.memory_space<vmem>>, vector<1x256x6xf32>
    %101 = vector.shape_cast %100 : vector<1x256x6xf32> to vector<256x6xf32>
    %cst_88 = arith.constant dense<0.000000e+00> : vector<1x6xf32>
    %102 = tpu.matmul %99, %101, %cst_88 {dimension_numbers = #tpu.dot_dimension_numbers<[1], [0], [0], [1], [0, 0, 1, 1], [], []>} : vector<1x256xf32>, vector<256x6xf32>, vector<1x6xf32> -> vector<1x6xf32>
    %103 = arith.addf %89, %102 : vector<1x6xf32>
    %104 = vector.extract_strided_slice %98 {offsets = [1, 0], sizes = [1, 256], strides = [1, 1]} : vector<4x256xf32> to vector<1x256xf32>
    %c1_89 = arith.constant 1 : index
    %c0_90 = arith.constant 0 : index
    %c0_91 = arith.constant 0 : index
    %105 = vector.load %arg5[%c1_89, %c0_90, %c0_91] : memref<4x256x6xf32, #tpu.memory_space<vmem>>, vector<1x256x6xf32>
    %106 = vector.shape_cast %105 : vector<1x256x6xf32> to vector<256x6xf32>
    %cst_92 = arith.constant dense<0.000000e+00> : vector<1x6xf32>
    %107 = tpu.matmul %104, %106, %cst_92 {dimension_numbers = #tpu.dot_dimension_numbers<[1], [0], [0], [1], [0, 0, 1, 1], [], []>} : vector<1x256xf32>, vector<256x6xf32>, vector<1x6xf32> -> vector<1x6xf32>
    %108 = arith.addf %103, %107 : vector<1x6xf32>
    %109 = vector.extract_strided_slice %98 {offsets = [2, 0], sizes = [1, 256], strides = [1, 1]} : vector<4x256xf32> to vector<1x256xf32>
    %c2_93 = arith.constant 2 : index
    %c0_94 = arith.constant 0 : index
    %c0_95 = arith.constant 0 : index
    %110 = vector.load %arg5[%c2_93, %c0_94, %c0_95] : memref<4x256x6xf32, #tpu.memory_space<vmem>>, vector<1x256x6xf32>
    %111 = vector.shape_cast %110 : vector<1x256x6xf32> to vector<256x6xf32>
    %cst_96 = arith.constant dense<0.000000e+00> : vector<1x6xf32>
    %112 = tpu.matmul %109, %111, %cst_96 {dimension_numbers = #tpu.dot_dimension_numbers<[1], [0], [0], [1], [0, 0, 1, 1], [], []>} : vector<1x256xf32>, vector<256x6xf32>, vector<1x6xf32> -> vector<1x6xf32>
    %113 = arith.addf %108, %112 : vector<1x6xf32>
    %114 = vector.extract_strided_slice %98 {offsets = [3, 0], sizes = [1, 256], strides = [1, 1]} : vector<4x256xf32> to vector<1x256xf32>
    %c3_97 = arith.constant 3 : index
    %c0_98 = arith.constant 0 : index
    %c0_99 = arith.constant 0 : index
    %115 = vector.load %arg5[%c3_97, %c0_98, %c0_99] : memref<4x256x6xf32, #tpu.memory_space<vmem>>, vector<1x256x6xf32>
    %116 = vector.shape_cast %115 : vector<1x256x6xf32> to vector<256x6xf32>
    %cst_100 = arith.constant dense<0.000000e+00> : vector<1x6xf32>
    %117 = tpu.matmul %114, %116, %cst_100 {dimension_numbers = #tpu.dot_dimension_numbers<[1], [0], [0], [1], [0, 0, 1, 1], [], []>} : vector<1x256xf32>, vector<256x6xf32>, vector<1x6xf32> -> vector<1x6xf32>
    %118 = arith.addf %113, %117 : vector<1x6xf32>
    %c1_101 = arith.constant 1 : index
    %c0_102 = arith.constant 0 : index
    %119 = vector.load %arg7[%c1_101, %c0_102] : memref<2x6xf32, #tpu.memory_space<vmem>>, vector<1x6xf32>
    tpu.vector_store %arg7[%c1_101, %c0_102], %118 {strides = array<i32>} : memref<2x6xf32, #tpu.memory_space<vmem>>, vector<1x6xf32>,
    return
  }
}

</mosaic_0001>

<bundles_post_ra>
// kernel: segmentator_forward.1
= control target key start
LH: loop header
LB: loop body
LE: loop exit
PB: predicated region body
PF: predicated region fallthrough
CT: control target
= control target key end

     0   :  { %vm51_vm0 = vcmask 1044480   ;;  %v3721_v7 = vmov 0.0   ;;  %v3722_v13 = vmov 0   ;;  %vm3723_vm1 = vmmov 1   ;;  %s5556_s0 = inlined_call_operand.vmem [shape: f32[2,45,256], index: 0, kind: input, shape index: {}]   ;;  %s5557_s1 = inlined_call_operand.vmem [shape: f32[2,45,256], index: 1, kind: input, shape index: {}]   ;;  %s5558_s2 = inlined_call_operand.vmem [shape: f32[4,45], index: 2, kind: input, shape index: {}]   ;;  %s5559_s3 = inlined_call_operand.vmem [shape: f32[4,1], index: 3, kind: input, shape index: {}]   ;;  %s5560_s4 = inlined_call_operand.vmem [shape: f32[4,256,6], index: 4, kind: input, shape index: {}]   ;;  %s5561_s5 = inlined_call_operand.vmem [shape: f32[4,256,6], index: 5, kind: input, shape index: {}]   ;;  %s5562_s6 = inlined_call_operand.vmem [shape: f32[1,6], index: 6, kind: input, shape index: {}]   ;;  %s5563_s7 = inlined_call_operand.hbm [shape: f32[2,6], index: 7, kind: output, shape index: {}]  }
   0x1   :  { %v30_v0 = vld [vmem:[%s5556_s0 + $0x8] sm:$0xff]  ;;  %v32_v1 = vld [vmem:[%s5556_s0 + $0x18] sm:$0xff]  ;;  %v29_v2 = vld [vmem:[%s5556_s0] sm:$0xff]  ;;  %122 = vmatprep.mubr.f32.mxu0 %v3721_v7  ;;  %3696 = vset.pattern.permute.xlu0 %v3722_v13  ;;  %vm47_vm3 = vcmask 367616  }
   0x2   :  { %v3124_v3 = vpack.c.bf16 %v32_v1, %v30_v0  ;;  %v31_v4 = vld [vmem:[%s5556_s0 + $0x10] sm:$0xff]  ;;  %v34_v5 = vld [vmem:[%s5556_s0 + $0x28] sm:$0xff]  ;;  %v36_v6 = vld [vmem:[%s5556_s0 + $0x38] sm:$0xff] }
   0x3   :  { %v3126_v8 = vpack.c.bf16 %v31_v4, %v29_v2  ;;  %v3128_v9 = vpack.c.bf16 %v36_v6, %v34_v5  ;;  %v33_v10 = vld [vmem:[%s5556_s0 + $0x20] sm:$0xff]  ;;  %v35_v11 = vld [vmem:[%s5556_s0 + $0x30] sm:$0xff]  ;;  %v38_v12 = vld [vmem:[%s5556_s0 + $0x48] sm:$0xff] }
   0x4   :  { %3125 = vmatprep.subr.bf16.mxu0 %v3124_v3  ;;  %v40_v14 = vld [vmem:[%s5556_s0 + $0x58] sm:$0x1f]  ;;  %vm3797_vm2 = vmpackc.low %vm51_vm0, %vm3723_vm1  ;;  %v3130_v16 = vpack.c.bf16 %v35_v11, %v33_v10  ;;  %v37_v17 = vld [vmem:[%s5556_s0 + $0x40] sm:$0xff] }
   0x5   :  { %3127 = vmatpush1.bf16.msra.mxu0 %v3126_v8  ;;  %v39_v18 = vld [vmem:[%s5556_s0 + $0x50] sm:$0x1f]  ;;  %v41_v19 = vld [vmem:[%s5559_s3] sm:$0xf]  ;;  %v3132_v20 = vpack.c.bf16 %v40_v14, %v38_v12  ;;  %v148_v23 = vld [vmem:[%s5560_s4 + $0x88] sm:$0xff] }
   0x6   :  { %3129 = vmatprep.subr.bf16.mxu0 %v3128_v9  ;;  %44 = vperm.xlu0 %3696, %v41_v19   ;;  %v1097_v21 = vld [vmem:[%s5559_s3] sm:$0xf]  ;;  %v132_v26 = vld [vmem:[%s5560_s4 + $0x8] sm:$0xff]  ;;  %v3135_v30 = vpack.c.bf16 %v39_v18, %v37_v17  ;;  %v149_v31 = vld [vmem:[%s5560_s4 + $0x90] sm:$0xff] }
   0x7   :  { %v147_v22 = vld [vmem:[%s5560_s4 + $0x80] sm:$0xff]  ;;  %v2164_v29 = vld [vmem:[%s5560_s4 + $0x188] sm:$0xff]  ;;  %v150_v32 = vld [vmem:[%s5560_s4 + $0x98] sm:$0xff] }
   0x8   :  { %v3138_v24 = vpack.c.bf16 %v148_v23, %v147_v22  ;;  %v131_v25 = vld [vmem:[%s5560_s4] sm:$0xff]  ;;  %v133_v33 = vld [vmem:[%s5560_s4 + $0x10] sm:$0xff]  ;;  %v2148_v36 = vld [vmem:[%s5560_s4 + $0x108] sm:$0xff]  ;;  %v3142_v37 = vpack.c.bf16 %v150_v32, %v149_v31 }
   0x9   :  { %v2163_v27 = vld [vmem:[%s5560_s4 + $0x180] sm:$0xff]  ;;  %v3140_v28 = vpack.c.bf16 %v132_v26, %v131_v25  ;;  %3131 = vmatpush1.bf16.msra.mxu0 %v3130_v16  ;;  %v134_v38 = vld [vmem:[%s5560_s4 + $0x18] sm:$0xff]  ;;  %v2165_v40 = vld [vmem:[%s5560_s4 + $0x190] sm:$0xff] }
   0xa   :  { %3139 = vmatprep.subr.bf16.mxu1 %v3138_v24  ;;  %3134 = vmatprep.subr.msk.bf16.mxu0 %vm3797_vm2, %v3132_v20  ;;  %v3170_v34 = vpack.c.bf16 %v2164_v29, %v2163_v27  ;;  %v2147_v35 = vld [vmem:[%s5560_s4 + $0x100] sm:$0xff]  ;;  %v3144_v39 = vpack.c.bf16 %v134_v38, %v133_v33  ;;  %v2166_v41 = vld [vmem:[%s5560_s4 + $0x198] sm:$0xff]  ;;  %v152_v43 = vld [vmem:[%s5560_s4 + $0xa8] sm:$0xff] }
   0xb   :  { %1100 = vperm.xlu0 %3696, %v1097_v21   ;;  %3141 = vmatpush3.bf16.msra.mxu1 %v3140_v28  ;;  %v151_v42 = vld [vmem:[%s5560_s4 + $0xa0] sm:$0xff]  ;;  %v136_v45 = vld [vmem:[%s5560_s4 + $0x28] sm:$0xff]  ;;  %v3172_v47 = vpack.c.bf16 %v2148_v36, %v2147_v35  ;;  %v2149_v48 = vld [vmem:[%s5560_s4 + $0x110] sm:$0xff]  ;;  %v3174_v50 = vpack.c.bf16 %v2166_v41, %v2165_v40 }
   0xc   :  { %3143 = vmatprep.subr.bf16.mxu1 %v3142_v37  ;;  %v135_v44 = vld [vmem:[%s5560_s4 + $0x20] sm:$0xff]  ;;  %v3146_v49 = vpack.c.bf16 %v152_v43, %v151_v42  ;;  %v2150_v51 = vld [vmem:[%s5560_s4 + $0x118] sm:$0xff]  ;;  %v153_v52 = vld [vmem:[%s5560_s4 + $0xb0] sm:$0xff] }
   0xd   :  { %3137 = vmatpush1.bf16.msk.msra.mxu0 %vm3797_vm2, %v3135_v30  ;;  %v3874_v46 = vld [vmem:[%s5558_s2] sm:$0xf]  ;;  %v154_v53 = vld [vmem:[%s5560_s4 + $0xb8] sm:$0xff]  ;;  %v3148_v54 = vpack.c.bf16 %v136_v45, %v135_v44  ;;  %v2168_v56 = vld [vmem:[%s5560_s4 + $0x1a8] sm:$0xff]  ;;  %v3176_v60 = vpack.c.bf16 %v2150_v51, %v2149_v48 }
   0xe   :  { %3171 = vmatprep.subr.bf16.mxu0 %v3170_v34  ;;  %v2167_v55 = vld [vmem:[%s5560_s4 + $0x1a0] sm:$0xff]  ;;  %v3150_v57 = vpack.c.bf16 %v154_v53, %v153_v52  ;;  %v137_v58 = vld [vmem:[%s5560_s4 + $0x30] sm:$0xff]  ;;  %v138_v59 = vld [vmem:[%s5560_s4 + $0x38] sm:$0xff] }
   0xf   :  { %3145 = vmatpush3.bf16.msra.mxu1 %v3144_v39  ;;  %v155_v61 = vld [vmem:[%s5560_s4 + $0xc0] sm:$0xff]  ;;  %v156_v62 = vld [vmem:[%s5560_s4 + $0xc8] sm:$0xff]  ;;  %v3178_v63 = vpack.c.bf16 %v2168_v56, %v2167_v55  ;;  %v3152_v2 = vpack.c.bf16 %v138_v59, %v137_v58  ;;  %v2169_v3 = vld [vmem:[%s5560_s4 + $0x1b0] sm:$0xff] }
  0x10   :  { %2146 = vmatmul.mubr.msk.f32.vlgmr.msra.gmra.mrb[0].mxu0 %vm47_vm3, %v3874_v46  ;;  %3147 = vmatprep.subr.bf16.mxu1 %v3146_v49  ;;  %v2151_v0 = vld [vmem:[%s5560_s4 + $0x120] sm:$0xff]  ;;  %v2152_v1 = vld [vmem:[%s5560_s4 + $0x128] sm:$0xff]  ;;  %v2170_v4 = vld [vmem:[%s5560_s4 + $0x1b8] sm:$0xff]  ;;  %v3154_v5 = vpack.c.bf16 %v156_v62, %v155_v61 }
  0x11   :  { %3173 = vmatpush3.bf16.msra.mxu0 %v3172_v47  ;;  %v139_v6 = vld [vmem:[%s5560_s4 + $0x40] sm:$0xff]  ;;  %v140_v8 = vld [vmem:[%s5560_s4 + $0x48] sm:$0xff]  ;;  %v3180_v9 = vpack.c.bf16 %v2152_v1, %v2151_v0  ;;  %v157_v10 = vld [vmem:[%s5560_s4 + $0xd0] sm:$0xff]  ;;  %v3182_v12 = vpack.c.bf16 %v2170_v4, %v2169_v3 }
  0x12   :  { %3175 = vmatprep.subr.bf16.mxu0 %v3174_v50  ;;  %v158_v11 = vld [vmem:[%s5560_s4 + $0xd8] sm:$0xff]  ;;  %v2153_v13 = vld [vmem:[%s5560_s4 + $0x130] sm:$0xff]  ;;  %v3156_v16 = vpack.c.bf16 %v140_v8, %v139_v6  ;;  %v2171_v17 = vld [vmem:[%s5560_s4 + $0x1c0] sm:$0xff] }
  0x13   :  { %3149 = vmatpush3.bf16.msra.mxu1 %v3148_v54  ;;  %v2154_v14 = vld [vmem:[%s5560_s4 + $0x138] sm:$0xff]  ;;  %v2172_v18 = vld [vmem:[%s5560_s4 + $0x1c8] sm:$0xff] }
  0x14   :  { %3151 = vmatprep.subr.bf16.mxu1 %v3150_v57 }
  0x15   :  { %3177 = vmatpush3.bf16.msra.mxu0 %v3176_v60 }
  0x16   :  { %3179 = vmatprep.subr.bf16.mxu0 %v3178_v63 }
  0x17   :  { %3153 = vmatpush3.bf16.msra.mxu1 %v3152_v2 }
  0x18   :  { %12 = vsyncpa [#allocation3], 0  ;;  %3155 = vmatprep.subr.bf16.mxu1 %v3154_v5  ;;  %v3158_v19 = vpack.c.bf16 %v158_v11, %v157_v10  ;;  %v141_v20 = vld [vmem:[%s5560_s4 + $0x50] sm:$0xff]  ;;  %v142_v21 = vld [vmem:[%s5560_s4 + $0x58] sm:$0xff]  ;;  %v3184_v22 = vpack.c.bf16 %v2154_v14, %v2153_v13  ;;  %v3186_v25 = vpack.c.bf16 %v2172_v18, %v2171_v17  ;;  %vm1080_vm4 = vcmask 40960  }
  0x19   :  { %3181 = vmatpush3.bf16.msra.mxu0 %v3180_v9  ;;  %v159_v23 = vld [vmem:[%s5560_s4 + $0xe0] sm:$0xff]  ;;  %v160_v24 = vld [vmem:[%s5560_s4 + $0xe8] sm:$0xff]  ;;  %v3160_v28 = vpack.c.bf16 %v142_v21, %v141_v20  ;;  %v2173_v29 = vld [vmem:[%s5560_s4 + $0x1d0] sm:$0xff] }
  0x1a   :  { %3183 = vmatprep.subr.bf16.mxu0 %v3182_v12  ;;  %v2155_v26 = vld [vmem:[%s5560_s4 + $0x140] sm:$0xff]  ;;  %v2156_v27 = vld [vmem:[%s5560_s4 + $0x148] sm:$0xff]  ;;  %v2174_v30 = vld [vmem:[%s5560_s4 + $0x1d8] sm:$0xff]  ;;  %v3162_v31 = vpack.c.bf16 %v160_v24, %v159_v23 }
  0x1b   :  { %3157 = vmatpush3.bf16.msra.mxu1 %v3156_v16  ;;  %v143_v32 = vld [vmem:[%s5560_s4 + $0x60] sm:$0xff]  ;;  %v144_v33 = vld [vmem:[%s5560_s4 + $0x68] sm:$0xff]  ;;  %v3188_v34 = vpack.c.bf16 %v2156_v27, %v2155_v26  ;;  %v3190_v35 = vpack.c.bf16 %v2174_v30, %v2173_v29  ;;  %v2157_v36 = vld [vmem:[%s5560_s4 + $0x150] sm:$0xff] }
  0x1c   :  { %3159 = vmatprep.subr.bf16.mxu1 %v3158_v19  ;;  %v2158_v37 = vld [vmem:[%s5560_s4 + $0x158] sm:$0xff]  ;;  %v3164_v38 = vpack.c.bf16 %v144_v33, %v143_v32  ;;  %v2175_v40 = vld [vmem:[%s5560_s4 + $0x1e0] sm:$0xff]  ;;  %v2176_v41 = vld [vmem:[%s5560_s4 + $0x1e8] sm:$0xff] }
  0x1d   :  { %3185 = vmatpush3.bf16.msra.mxu0 %v3184_v22  ;;  %v3192_v39 = vpack.c.bf16 %v2158_v37, %v2157_v36  ;;  %v3194_v42 = vpack.c.bf16 %v2176_v41, %v2175_v40  ;;  %v2159_v43 = vld [vmem:[%s5560_s4 + $0x160] sm:$0xff]  ;;  %v2160_v44 = vld [vmem:[%s5560_s4 + $0x168] sm:$0xff]  ;;  %v161_v47 = vld [vmem:[%s5560_s4 + $0xf0] sm:$0xff] }
  0x1e   :  { %3187 = vmatprep.subr.bf16.mxu0 %v3186_v25  ;;  %v3196_v45 = vpack.c.bf16 %v2160_v44, %v2159_v43  ;;  %v162_v48 = vld [vmem:[%s5560_s4 + $0xf8] sm:$0xff]  ;;  %v145_v50 = vld [vmem:[%s5560_s4 + $0x70] sm:$0xff]  ;;  %v2195_v59 = vld [vmem:[%s5560_s4 + $0x280] sm:$0xff] }
  0x1f   :  { %3161 = vmatpush3.bf16.msra.mxu1 %v3160_v28  ;;  %v3166_v49 = vpack.c.bf16 %v162_v48, %v161_v47  ;;  %v146_v51 = vld [vmem:[%s5560_s4 + $0x78] sm:$0xff]  ;;  %v2177_v53 = vld [vmem:[%s5560_s4 + $0x1f0] sm:$0xff]  ;;  %v2196_v60 = vld [vmem:[%s5560_s4 + $0x288] sm:$0xff] }
  0x20   :  { %3163 = vmatprep.subr.bf16.mxu1 %v3162_v31  ;;  %v3168_v52 = vpack.c.bf16 %v146_v51, %v145_v50  ;;  %v2178_v54 = vld [vmem:[%s5560_s4 + $0x1f8] sm:$0xff]  ;;  %v2161_v56 = vld [vmem:[%s5560_s4 + $0x170] sm:$0xff]  ;;  %v3202_v61 = vpack.c.bf16 %v2196_v60, %v2195_v59  ;;  %v2227_v62 = vld [vmem:[%s5560_s4 + $0x380] sm:$0xff] }
  0x21   :  { %3189 = vmatpush3.bf16.msra.mxu0 %v3188_v34  ;;  %v3198_v55 = vpack.c.bf16 %v2178_v54, %v2177_v53  ;;  %v2162_v57 = vld [vmem:[%s5560_s4 + $0x178] sm:$0xff]  ;;  %v2228_v63 = vld [vmem:[%s5560_s4 + $0x388] sm:$0xff]  ;;  %v2179_v5 = vld [vmem:[%s5560_s4 + $0x200] sm:$0xff] }
  0x22   :  { %3191 = vmatprep.subr.bf16.mxu0 %v3190_v35  ;;  %v3200_v58 = vpack.c.bf16 %v2162_v57, %v2161_v56  ;;  %v3234_v0 = vpack.c.bf16 %v2228_v63, %v2227_v62  ;;  %v2180_v6 = vld [vmem:[%s5560_s4 + $0x208] sm:$0xff]  ;;  %v2211_v9 = vld [vmem:[%s5560_s4 + $0x300] sm:$0xff]  ;;  %v2197_v12 = vld [vmem:[%s5560_s4 + $0x290] sm:$0xff] }
  0x23   :  { %3165 = vmatpush3.bf16.msra.mxu1 %v3164_v38  ;;  %v2212_v11 = vld [vmem:[%s5560_s4 + $0x308] sm:$0xff]  ;;  %v2198_v13 = vld [vmem:[%s5560_s4 + $0x298] sm:$0xff]  ;;  %v3204_v16 = vpack.c.bf16 %v2180_v6, %v2179_v5  ;;  %v2229_v17 = vld [vmem:[%s5560_s4 + $0x390] sm:$0xff] }
  0x24   :  { %3167 = vmatprep.subr.bf16.mxu1 %v3166_v49  ;;  %v2230_v18 = vld [vmem:[%s5560_s4 + $0x398] sm:$0xff]  ;;  %v2181_v19 = vld [vmem:[%s5560_s4 + $0x210] sm:$0xff]  ;;  %v3236_v23 = vpack.c.bf16 %v2212_v11, %v2211_v9  ;;  %v3206_v24 = vpack.c.bf16 %v2198_v13, %v2197_v12  ;;  %v2199_v25 = vld [vmem:[%s5560_s4 + $0x2a0] sm:$0xff] }
  0x25   :  { %3193 = vmatpush3.bf16.msra.mxu0 %v3192_v39  ;;  %v2182_v20 = vld [vmem:[%s5560_s4 + $0x218] sm:$0xff]  ;;  %v2200_v26 = vld [vmem:[%s5560_s4 + $0x2a8] sm:$0xff]  ;;  %v3238_v28 = vpack.c.bf16 %v2230_v18, %v2229_v17  ;;  %v2213_v29 = vld [vmem:[%s5560_s4 + $0x310] sm:$0xff] }
  0x26   :  { %3195 = vmatprep.subr.bf16.mxu0 %v3194_v42  ;;  %v2214_v30 = vld [vmem:[%s5560_s4 + $0x318] sm:$0xff]  ;;  %v3208_v31 = vpack.c.bf16 %v2182_v20, %v2181_v19  ;;  %v2231_v32 = vld [vmem:[%s5560_s4 + $0x3a0] sm:$0xff]  ;;  %v2232_v33 = vld [vmem:[%s5560_s4 + $0x3a8] sm:$0xff]  ;;  %v3210_v35 = vpack.c.bf16 %v2200_v26, %v2199_v25 }
  0x27   :  { %3169 = vmatpush3.bf16.msra.mxu1 %v3168_v52  ;;  %v2183_v36 = vld [vmem:[%s5560_s4 + $0x220] sm:$0xff]  ;;  %v2184_v37 = vld [vmem:[%s5560_s4 + $0x228] sm:$0xff]  ;;  %v3240_v38 = vpack.c.bf16 %v2214_v30, %v2213_v29  ;;  %v2201_v39 = vld [vmem:[%s5560_s4 + $0x2b0] sm:$0xff]  ;;  %v3242_v41 = vpack.c.bf16 %v2232_v33, %v2231_v32 }
  0x28   :  { %3203 = vmatprep.subr.bf16.mxu1 %v3202_v61  ;;  %v2202_v40 = vld [vmem:[%s5560_s4 + $0x2b8] sm:$0xff]  ;;  %v2215_v42 = vld [vmem:[%s5560_s4 + $0x320] sm:$0xff]  ;;  %v2216_v43 = vld [vmem:[%s5560_s4 + $0x328] sm:$0xff]  ;;  %v3212_v44 = vpack.c.bf16 %v2184_v37, %v2183_v36 }
  0x29   :  { %3197 = vmatpush3.bf16.msra.mxu0 %v3196_v45  ;;  %v2233_v45 = vld [vmem:[%s5560_s4 + $0x3b0] sm:$0xff]  ;;  %v2234_v47 = vld [vmem:[%s5560_s4 + $0x3b8] sm:$0xff]  ;;  %v3214_v48 = vpack.c.bf16 %v2202_v40, %v2201_v39  ;;  %v3244_v51 = vpack.c.bf16 %v2216_v43, %v2215_v42  ;;  %v2203_v52 = vld [vmem:[%s5560_s4 + $0x2c0] sm:$0xff] }
  0x2a   :  { %3199 = vmatprep.subr.bf16.mxu0 %v3198_v55  ;;  %v2185_v49 = vld [vmem:[%s5560_s4 + $0x230] sm:$0xff]  ;;  %v2186_v50 = vld [vmem:[%s5560_s4 + $0x238] sm:$0xff]  ;;  %v2204_v53 = vld [vmem:[%s5560_s4 + $0x2c8] sm:$0xff]  ;;  %v3246_v54 = vpack.c.bf16 %v2234_v47, %v2233_v45 }
  0x2b   :  { %v2217_v55 = vld [vmem:[%s5560_s4 + $0x330] sm:$0xff]  ;;  %v2218_v56 = vld [vmem:[%s5560_s4 + $0x338] sm:$0xff]  ;;  %v3216_v57 = vpack.c.bf16 %v2186_v50, %v2185_v49  ;;  %v2236_v59 = vld [vmem:[%s5560_s4 + $0x3c8] sm:$0xff]  ;;  %v3218_v60 = vpack.c.bf16 %v2204_v53, %v2203_v52 }
  0x2c   :  { %v2187_v61 = vld [vmem:[%s5560_s4 + $0x240] sm:$0xff]  ;;  %v2188_v62 = vld [vmem:[%s5560_s4 + $0x248] sm:$0xff]  ;;  %v3248_v63 = vpack.c.bf16 %v2218_v56, %v2217_v55  ;;  %v2238_v9 = vld [vmem:[%s5560_s4 + $0x3d8] sm:$0xff] }
  0x2d   :  { %3201 = vmatpush3.bf16.msra.mxu0 %v3200_v58  ;;  %v2235_v58 = vld [vmem:[%s5560_s4 + $0x3c0] sm:$0xff]  ;;  %v2220_v5 = vld [vmem:[%s5560_s4 + $0x348] sm:$0xff]  ;;  %v3220_v6 = vpack.c.bf16 %v2188_v62, %v2187_v61  ;;  %v2189_v12 = vld [vmem:[%s5560_s4 + $0x250] sm:$0xff] }
  0x2e   :  { %3235 = vmatprep.subr.bf16.mxu0 %v3234_v0  ;;  %v2205_v0 = vld [vmem:[%s5560_s4 + $0x2d0] sm:$0xff]  ;;  %v2190_v13 = vld [vmem:[%s5560_s4 + $0x258] sm:$0xff]  ;;  %v2208_v17 = vld [vmem:[%s5560_s4 + $0x2e8] sm:$0xff] }
  0x2f   :  { %v2221_v19 = vld [vmem:[%s5560_s4 + $0x350] sm:$0xff]  ;;  %v2222_v20 = vld [vmem:[%s5560_s4 + $0x358] sm:$0xff]  ;;  %v2191_v25 = vld [vmem:[%s5560_s4 + $0x260] sm:$0xff] }
  0x30   :  { %v2192_v26 = vld [vmem:[%s5560_s4 + $0x268] sm:$0xff]  ;;  %v2210_v29 = vld [vmem:[%s5560_s4 + $0x2f8] sm:$0xff]  ;;  %v2193_v37 = vld [vmem:[%s5560_s4 + $0x270] sm:$0xff] }
  0x31   :  { %v2224_v32 = vld [vmem:[%s5560_s4 + $0x368] sm:$0xff]  ;;  %v3228_v33 = vpack.c.bf16 %v2192_v26, %v2191_v25  ;;  %v2225_v43 = vld [vmem:[%s5560_s4 + $0x370] sm:$0xff]  ;;  %v567_v52 = vld [vmem:[%s5557_s1 + $0x38] sm:$0xff] }
  0x32   :  { %v561_v40 = vld [vmem:[%s5557_s1 + $0x8] sm:$0xff]  ;;  %v562_v49 = vld [vmem:[%s5557_s1 + $0x10] sm:$0xff]  ;;  %v564_v56 = vld [vmem:[%s5557_s1 + $0x20] sm:$0xff] }
  0x33   :  { %v2249_v26 = vld [vmem:[%s5561_s5 + $0x118] sm:$0xff]  ;;  %v1704_v15 = vld [vmem:[%s5561_s5 + $0x8] sm:$0xff] }
  0x85   :  { %v4028_v1 = vpop.permute.xlu0 %44 }
  0xe3   :  { %v124_v2 = vpop.f32.mrb[0].mxu0 }
  0xe4   :  { %v125_v3 = vadd.f32 %v124_v2, %v4028_v1  ;;  %v126_v4 = vpop.f32.mrb[1].mxu0  ;;  %v2206_v2 = vld [vmem:[%s5560_s4 + $0x2d8] sm:$0xff] }
  0xe5   :  { %v127_v8 = vadd.f32 %v126_v4, %v4028_v1  ;;  %v2219_v4 = vld [vmem:[%s5560_s4 + $0x340] sm:$0xff]  ;;  %v3222_v11 = vpack.c.bf16 %v2206_v2, %v2205_v0  ;;  %v570_v0 = vld [vmem:[%s5557_s1 + $0x50] sm:$0x1f] }
  0xe6   :  { %v4041_v10 = vmax.f32 %v125_v3, 0.0  ;;  %v3250_v3 = vpack.c.bf16 %v2236_v59, %v2235_v58  ;;  %v569_v58 = vld [vmem:[%s5557_s1 + $0x48] sm:$0xff]  ;;  %v571_v59 = vld [vmem:[%s5557_s1 + $0x58] sm:$0x1f] }
  0xe7   :  { %v130_v14 = vmax.f32 %v127_v8, 0.0  ;;  %v2237_v8 = vld [vmem:[%s5560_s4 + $0x3d0] sm:$0xff]  ;;  %v3274_v62 = vpack.c.bf16 %v571_v59, %v569_v58  ;;  %v2270_v59 = vld [vmem:[%s5561_s5 + $0x1c0] sm:$0xff] }
  0xe8   :  { %v269_v27 = vrot.slane %v4041_v10, 1  ;;  %v3254_v18 = vpack.c.bf16 %v2238_v9, %v2237_v8  ;;  %v2263_v8 = vld [vmem:[%s5561_s5 + $0x188] sm:$0xff] }
  0xe9   :  { %227 = vmatprep.mubr.f32.mxu1 %v130_v14  ;;  %v270_v21 = vrot.slane %v130_v14, 1  ;;  %v378_v22 = vrot.slane %v130_v14, 2  ;;  %v486_v34 = vrot.slane %v130_v14, 3  ;;  %v3252_v14 = vpack.c.bf16 %v2220_v5, %v2219_v4  ;;  %v651_v4 = vld [vmem:[%s5561_s5] sm:$0xff] }
  0xea   :  { %228 = vmatmul.mubr.f32.vlgmr.msra.gmra.mrb[0].mxu1 %v4041_v10 }
  0xeb   :  { %3205 = vmatpush3.bf16.msra.mxu1 %v3204_v16  ;;  %337 = vmatprep.mubr.f32.mxu0 %v270_v21  ;;  %v2207_v16 = vld [vmem:[%s5560_s4 + $0x2e0] sm:$0xff]  ;;  %v3224_v21 = vpack.c.bf16 %v2190_v13, %v2189_v12  ;;  %v2247_v13 = vld [vmem:[%s5561_s5 + $0x108] sm:$0xff] }
  0xec   :  { %445 = vmatprep.mubr.f32.mxu1 %v378_v22  ;;  %338 = vmatmul.mubr.f32.vlgmr.msra.gmra.mrb[2].mxu0 %v269_v27  ;;  %v2239_v22 = vld [vmem:[%s5560_s4 + $0x3e0] sm:$0xff]  ;;  %v3256_v27 = vpack.c.bf16 %v2222_v20, %v2221_v19  ;;  %v654_v19 = vld [vmem:[%s5561_s5 + $0x18] sm:$0xff] }
  0xed   :  { %3237 = vmatpush3.bf16.msra.mxu0 %v3236_v23  ;;  %3207 = vmatprep.subr.bf16.mxu1 %v3206_v24  ;;  %v2240_v23 = vld [vmem:[%s5560_s4 + $0x3e8] sm:$0xff]  ;;  %v3226_v24 = vpack.c.bf16 %v2208_v17, %v2207_v16  ;;  %v2246_v12 = vld [vmem:[%s5561_s5 + $0x100] sm:$0xff]  ;;  %v670_v17 = vld [vmem:[%s5561_s5 + $0x98] sm:$0xff] }
  0xee   :  { %553 = vmatprep.mubr.f32.mxu0 %v486_v34  ;;  %3239 = vmatprep.subr.bf16.mxu0 %v3238_v28  ;;  %v2209_v28 = vld [vmem:[%s5560_s4 + $0x2f0] sm:$0xff]  ;;  %v3258_v30 = vpack.c.bf16 %v2240_v23, %v2239_v22  ;;  %v3314_v16 = vpack.c.bf16 %v2247_v13, %v2246_v12  ;;  %v2265_v23 = vld [vmem:[%s5561_s5 + $0x198] sm:$0xff]  ;;  %v679_v13 = vld [vmem:[%s5561_s5 + $0xe0] sm:$0xff] }
  0xef   :  { %3209 = vmatpush3.bf16.msra.mxu1 %v3208_v31  ;;  %v2223_v31 = vld [vmem:[%s5560_s4 + $0x360] sm:$0xff]  ;;  %v2241_v34 = vld [vmem:[%s5560_s4 + $0x3f0] sm:$0xff]  ;;  %v3230_v36 = vpack.c.bf16 %v2210_v29, %v2209_v28  ;;  %v672_v28 = vld [vmem:[%s5561_s5 + $0xa8] sm:$0xff] }
  0xf0   :  { %3211 = vmatprep.subr.bf16.mxu1 %v3210_v35  ;;  %v2242_v35 = vld [vmem:[%s5560_s4 + $0x3f8] sm:$0xff]  ;;  %v3260_v39 = vpack.c.bf16 %v2224_v32, %v2223_v31  ;;  %v2264_v22 = vld [vmem:[%s5561_s5 + $0x190] sm:$0xff]  ;;  %v655_v31 = vld [vmem:[%s5561_s5 + $0x20] sm:$0xff] }
  0xf1   :  { %3241 = vmatpush3.bf16.msra.mxu0 %v3240_v38  ;;  %v2194_v38 = vld [vmem:[%s5560_s4 + $0x278] sm:$0xff]  ;;  %v3262_v42 = vpack.c.bf16 %v2242_v35, %v2241_v34  ;;  %v3316_v25 = vpack.c.bf16 %v2265_v23, %v2264_v22  ;;  %v656_v32 = vld [vmem:[%s5561_s5 + $0x28] sm:$0xff]  ;;  %v2250_v35 = vld [vmem:[%s5561_s5 + $0x120] sm:$0xff] }
  0xf2   :  { %3243 = vmatprep.subr.bf16.mxu0 %v3242_v41  ;;  %v563_v41 = vld [vmem:[%s5557_s1 + $0x18] sm:$0xff]  ;;  %v3232_v45 = vpack.c.bf16 %v2194_v38, %v2193_v37  ;;  %v2267_v34 = vld [vmem:[%s5561_s5 + $0x1a8] sm:$0xff]  ;;  %v3290_v37 = vpack.c.bf16 %v656_v32, %v655_v31 }
  0xf3   :  { %3213 = vmatpush3.bf16.msra.mxu1 %v3212_v44  ;;  %v2226_v44 = vld [vmem:[%s5560_s4 + $0x378] sm:$0xff]  ;;  %v3266_v47 = vpack.c.bf16 %v563_v41, %v561_v40  ;;  %v2275_v22 = vld [vmem:[%s5561_s5 + $0x1e8] sm:$0xff] }
  0xf4   :  { %3215 = vmatprep.subr.bf16.mxu1 %v3214_v48  ;;  %v560_v48 = vld [vmem:[%s5557_s1] sm:$0xff]  ;;  %v3264_v50 = vpack.c.bf16 %v2226_v44, %v2225_v43  ;;  %v674_v40 = vld [vmem:[%s5561_s5 + $0xb8] sm:$0xff]  ;;  %v657_v43 = vld [vmem:[%s5561_s5 + $0x30] sm:$0xff] }
  0xf5   :  { %3245 = vmatpush3.bf16.msra.mxu0 %v3244_v51  ;;  %v565_v51 = vld [vmem:[%s5557_s1 + $0x28] sm:$0xff]  ;;  %v3268_v53 = vpack.c.bf16 %v562_v49, %v560_v48  ;;  %v658_v44 = vld [vmem:[%s5561_s5 + $0x38] sm:$0xff] }
  0xf6   :  { %3247 = vmatprep.subr.bf16.mxu0 %v3246_v54  ;;  %v377_v54 = vrot.slane %v4041_v10, 2  ;;  %v3270_v55 = vpack.c.bf16 %v567_v52, %v565_v51  ;;  %v2269_v48 = vld [vmem:[%s5561_s5 + $0x1b8] sm:$0xff] }
  0xf7   :  { %3217 = vmatpush3.bf16.msra.mxu1 %v3216_v57  ;;  %v566_v57 = vld [vmem:[%s5557_s1 + $0x30] sm:$0xff]  ;;  %v2253_v51 = vld [vmem:[%s5561_s5 + $0x138] sm:$0xff] }
  0xf8   :  { %3219 = vmatprep.subr.bf16.mxu1 %v3218_v60  ;;  %v485_v60 = vrot.slane %v4041_v10, 3  ;;  %v3272_v61 = vpack.c.bf16 %v566_v57, %v564_v56  ;;  %v667_v10 = vld [vmem:[%s5561_s5 + $0x80] sm:$0xff]  ;;  %v660_v57 = vld [vmem:[%s5561_s5 + $0x48] sm:$0xff]  ;;  %v2257_v12 = vld [vmem:[%s5561_s5 + $0x158] sm:$0xff] }
  0xf9   :  { %3249 = vmatpush3.bf16.msra.mxu0 %v3248_v63  ;;  %v568_v63 = vld [vmem:[%s5557_s1 + $0x40] sm:$0xff]  ;;  %v666_v31 = vld [vmem:[%s5561_s5 + $0x78] sm:$0xff] }
  0xfa   :  { %3251 = vmatprep.subr.bf16.mxu0 %v3250_v3  ;;  %v3277_v2 = vpack.c.bf16 %v570_v0, %v568_v63  ;;  %v668_v3 = vld [vmem:[%s5561_s5 + $0x88] sm:$0xff]  ;;  %v659_v56 = vld [vmem:[%s5561_s5 + $0x40] sm:$0xff] }
  0xfb   :  { %3221 = vmatpush3.bf16.msra.mxu1 %v3220_v6  ;;  %v3280_v5 = vpack.c.bf16 %v668_v3, %v667_v10  ;;  %v652_v6 = vld [vmem:[%s5561_s5 + $0x8] sm:$0xff]  ;;  %v3298_v58 = vpack.c.bf16 %v660_v57, %v659_v56  ;;  %v678_v10 = vld [vmem:[%s5561_s5 + $0xd8] sm:$0xff] }
  0xfc   :  { %3223 = vmatprep.subr.bf16.mxu1 %v3222_v11  ;;  %v3282_v9 = vpack.c.bf16 %v652_v6, %v651_v4  ;;  %v2255_v63 = vld [vmem:[%s5561_s5 + $0x148] sm:$0xff]  ;;  %v661_v4 = vld [vmem:[%s5561_s5 + $0x50] sm:$0xff] }
  0xfd   :  { %3253 = vmatpush3.bf16.msra.mxu0 %v3252_v14  ;;  %v669_v14 = vld [vmem:[%s5561_s5 + $0x90] sm:$0xff] }
  0xfe   :  { %3255 = vmatprep.subr.bf16.mxu0 %v3254_v18  ;;  %v653_v18 = vld [vmem:[%s5561_s5 + $0x10] sm:$0xff]  ;;  %v3284_v20 = vpack.c.bf16 %v670_v17, %v669_v14  ;;  %v663_v17 = vld [vmem:[%s5561_s5 + $0x60] sm:$0xff] }
  0xff   :  { %3225 = vmatpush3.bf16.msra.mxu1 %v3224_v21  ;;  %v3286_v21 = vpack.c.bf16 %v654_v19, %v653_v18  ;;  %v664_v18 = vld [vmem:[%s5561_s5 + $0x68] sm:$0xff] }
 0x100   :  { %3227 = vmatprep.subr.bf16.mxu1 %v3226_v24  ;;  %v2248_v24 = vld [vmem:[%s5561_s5 + $0x110] sm:$0xff] }
 0x101   :  { %3257 = vmatpush3.bf16.msra.mxu0 %v3256_v27  ;;  %v671_v27 = vld [vmem:[%s5561_s5 + $0xa0] sm:$0xff]  ;;  %v3318_v29 = vpack.c.bf16 %v2249_v26, %v2248_v24 }
 0x102   :  { %3259 = vmatprep.subr.bf16.mxu0 %v3258_v30  ;;  %v3288_v30 = vpack.c.bf16 %v672_v28, %v671_v27  ;;  %v2258_v24 = vld [vmem:[%s5561_s5 + $0x160] sm:$0xff]  ;;  %v681_v27 = vld [vmem:[%s5561_s5 + $0xf0] sm:$0xff]  ;;  %v682_v28 = vld [vmem:[%s5561_s5 + $0xf8] sm:$0xff] }
 0x103   :  { %3229 = vmatpush3.bf16.msra.mxu1 %v3228_v33  ;;  %v2266_v33 = vld [vmem:[%s5561_s5 + $0x1a0] sm:$0xff] }
 0x104   :  { %3231 = vmatprep.subr.bf16.mxu1 %v3230_v36  ;;  %v2251_v36 = vld [vmem:[%s5561_s5 + $0x128] sm:$0xff]  ;;  %v3320_v38 = vpack.c.bf16 %v2267_v34, %v2266_v33  ;;  %v2276_v33 = vld [vmem:[%s5561_s5 + $0x1f0] sm:$0xff]  ;;  %v2277_v34 = vld [vmem:[%s5561_s5 + $0x1f8] sm:$0xff] }
 0x105   :  { %3261 = vmatpush3.bf16.msra.mxu0 %v3260_v39  ;;  %v673_v39 = vld [vmem:[%s5561_s5 + $0xb0] sm:$0xff]  ;;  %v3322_v41 = vpack.c.bf16 %v2251_v36, %v2250_v35  ;;  %v3340_v35 = vpack.c.bf16 %v2277_v34, %v2276_v33  ;;  %v2283_v33 = vld [vmem:[%s5561_s5 + $0x228] sm:$0xff] }
 0x106   :  { %3263 = vmatprep.subr.bf16.mxu0 %v3262_v42  ;;  %v3292_v42 = vpack.c.bf16 %v674_v40, %v673_v39  ;;  %v2260_v36 = vld [vmem:[%s5561_s5 + $0x170] sm:$0xff]  ;;  %v2294_v39 = vld [vmem:[%s5561_s5 + $0x280] sm:$0xff]  ;;  %v2295_v40 = vld [vmem:[%s5561_s5 + $0x288] sm:$0xff] }
 0x107   :  { %3233 = vmatpush3.bf16.msra.mxu1 %v3232_v45  ;;  %v3294_v45 = vpack.c.bf16 %v658_v44, %v657_v43  ;;  %v2327_v43 = vld [vmem:[%s5561_s5 + $0x388] sm:$0xff] }
 0x108   :  { %3267 = vmatprep.subr.bf16.mxu1 %v3266_v47  ;;  %v2268_v47 = vld [vmem:[%s5561_s5 + $0x1b0] sm:$0xff] }
 0x109   :  { %3265 = vmatpush3.bf16.msra.mxu0 %v3264_v50  ;;  %v3324_v49 = vpack.c.bf16 %v2269_v48, %v2268_v47  ;;  %v2252_v50 = vld [vmem:[%s5561_s5 + $0x130] sm:$0xff]  ;;  %v27_v47 = vld [vmem:[%s5562_s6] sm:$0x1] }
 0x10a   :  { %446 = vmatmul.mubr.f32.vlgmr.msra.gmra.mrb[2].mxu1 %v377_v54  ;;  %3281 = vmatprep.subr.bf16.mxu0 %v3280_v5  ;;  %v3326_v52 = vpack.c.bf16 %v2253_v51, %v2252_v50  ;;  %v676_v54 = vld [vmem:[%s5561_s5 + $0xc8] sm:$0xff]  ;;  %v662_v5 = vld [vmem:[%s5561_s5 + $0x58] sm:$0xff] }
 0x10b   :  { %3269 = vmatpush1.bf16.msra.mxu1 %v3268_v53  ;;  %642 = vmatprep.mubr.f32.mxu1 %v3721_v7  ;;  %v675_v53 = vld [vmem:[%s5561_s5 + $0xc0] sm:$0xff]  ;;  %v3302_v6 = vpack.c.bf16 %v662_v5, %v661_v4 }
 0x10c   :  { %554 = vmatmul.mubr.f32.vlgmr.msra.gmra.mrb[4].mxu0 %v485_v60  ;;  %3271 = vmatprep.subr.bf16.mxu1 %v3270_v55  ;;  %v3296_v55 = vpack.c.bf16 %v676_v54, %v675_v53  ;;  %v2271_v60 = vld [vmem:[%s5561_s5 + $0x1c8] sm:$0xff]  ;;  %v2310_v5 = vld [vmem:[%s5561_s5 + $0x300] sm:$0xff] }
 0x10d   :  { %3283 = vmatpush3.bf16.msra.mxu0 %v3282_v9 }
 0x10e   :  { %3285 = vmatprep.subr.bf16.mxu0 %v3284_v20  ;;  %v3306_v20 = vpack.c.bf16 %v664_v18, %v663_v17 }
 0x10f   :  { %3273 = vmatpush1.bf16.msra.mxu1 %v3272_v61  ;;  %v3328_v61 = vpack.c.bf16 %v2271_v60, %v2270_v59 }
 0x110   :  { %3276 = vmatprep.subr.msk.bf16.mxu1 %vm3797_vm2, %v3274_v62  ;;  %v2254_v62 = vld [vmem:[%s5561_s5 + $0x140] sm:$0xff] }
 0x111   :  { %3287 = vmatpush3.bf16.msra.mxu0 %v3286_v21  ;;  %v3330_v0 = vpack.c.bf16 %v2255_v63, %v2254_v62  ;;  %v2274_v21 = vld [vmem:[%s5561_s5 + $0x1e0] sm:$0xff] }
 0x112   :  { %3289 = vmatprep.subr.bf16.mxu0 %v3288_v30  ;;  %v3336_v23 = vpack.c.bf16 %v2275_v22, %v2274_v21  ;;  %v665_v30 = vld [vmem:[%s5561_s5 + $0x70] sm:$0xff]  ;;  %v2298_v21 = vld [vmem:[%s5561_s5 + $0x2a0] sm:$0xff]  ;;  %v2299_v22 = vld [vmem:[%s5561_s5 + $0x2a8] sm:$0xff] }
 0x113   :  { %3279 = vmatpush1.bf16.msk.msra.mxu1 %vm3797_vm2, %v3277_v2  ;;  %v677_v2 = vld [vmem:[%s5561_s5 + $0xd0] sm:$0xff]  ;;  %v3310_v32 = vpack.c.bf16 %v666_v31, %v665_v30  ;;  %v3352_v31 = vpack.c.bf16 %v2299_v22, %v2298_v21  ;;  %v2291_v21 = vld [vmem:[%s5561_s5 + $0x268] sm:$0xff] }
 0x114   :  { %v3300_v3 = vpack.c.bf16 %v678_v10, %v677_v2  ;;  %v2278_v10 = vld [vmem:[%s5561_s5 + $0x200] sm:$0xff] }
 0x115   :  { %3291 = vmatpush3.bf16.msra.mxu0 %v3290_v37  ;;  %v2261_v37 = vld [vmem:[%s5561_s5 + $0x178] sm:$0xff] }
 0x116   :  { %2245 = vmatmul.mubr.msk.f32.vlgmr.msra.gmra.mrb[4].mxu1 %vm47_vm3, %v3874_v46  ;;  %v2262_v46 = vld [vmem:[%s5561_s5 + $0x180] sm:$0xff]  ;;  %3293 = vmatprep.subr.bf16.mxu0 %v3292_v42 }
 0x117   :  { %v3312_v11 = vpack.c.bf16 %v2263_v8, %v2262_v46  ;;  %v2272_v46 = vld [vmem:[%s5561_s5 + $0x1d0] sm:$0xff]  ;;  %v2273_v8 = vld [vmem:[%s5561_s5 + $0x1d8] sm:$0xff]  ;;  %v2326_v42 = vld [vmem:[%s5561_s5 + $0x380] sm:$0xff] }
 0x118   :  { %v3332_v9 = vpack.c.bf16 %v2273_v8, %v2272_v46  ;;  %v3376_v44 = vpack.c.bf16 %v2327_v43, %v2326_v42  ;;  %v2311_v46 = vld [vmem:[%s5561_s5 + $0x308] sm:$0xff]  ;;  %v2296_v8 = vld [vmem:[%s5561_s5 + $0x290] sm:$0xff]  ;;  %v2333_v42 = vld [vmem:[%s5561_s5 + $0x3b8] sm:$0xff] }
 0x119   :  { %3313 = vmatprep.subr.bf16.mxu1 %v3312_v11  ;;  %3295 = vmatpush3.bf16.msra.mxu0 %v3294_v45  ;;  %v2256_v11 = vld [vmem:[%s5561_s5 + $0x150] sm:$0xff] }
 0x11a   :  { %3315 = vmatpush3.bf16.msra.mxu1 %v3314_v16  ;;  %3297 = vmatprep.subr.bf16.mxu0 %v3296_v55  ;;  %v3334_v14 = vpack.c.bf16 %v2257_v12, %v2256_v11  ;;  %v680_v16 = vld [vmem:[%s5561_s5 + $0xe8] sm:$0xff]  ;;  %v2328_v12 = vld [vmem:[%s5561_s5 + $0x390] sm:$0xff] }
 0x11b   :  { %3317 = vmatprep.subr.bf16.mxu1 %v3316_v25  ;;  %v3304_v19 = vpack.c.bf16 %v680_v16, %v679_v13  ;;  %v2259_v25 = vld [vmem:[%s5561_s5 + $0x168] sm:$0xff]  ;;  %v2329_v13 = vld [vmem:[%s5561_s5 + $0x398] sm:$0xff] }
 0x11c   :  { %v3338_v26 = vpack.c.bf16 %v2259_v25, %v2258_v24  ;;  %v2281_v16 = vld [vmem:[%s5561_s5 + $0x218] sm:$0xff]  ;;  %v3380_v24 = vpack.c.bf16 %v2329_v13, %v2328_v12  ;;  %v2312_v25 = vld [vmem:[%s5561_s5 + $0x310] sm:$0xff] }
 0x11d   :  { %3299 = vmatpush3.bf16.msra.mxu0 %v3298_v58  ;;  %v2320_v13 = vld [vmem:[%s5561_s5 + $0x350] sm:$0xff] }
 0x11e   :  { %3319 = vmatpush3.bf16.msra.mxu1 %v3318_v29  ;;  %3301 = vmatprep.subr.bf16.mxu0 %v3300_v3  ;;  %v3308_v29 = vpack.c.bf16 %v682_v28, %v681_v27  ;;  %v2279_v3 = vld [vmem:[%s5561_s5 + $0x208] sm:$0xff]  ;;  %v2330_v28 = vld [vmem:[%s5561_s5 + $0x3a0] sm:$0xff] }
 0x11f   :  { %3321 = vmatprep.subr.bf16.mxu1 %v3320_v38  ;;  %v3342_v38 = vpack.c.bf16 %v2261_v37, %v2260_v36  ;;  %v2301_v36 = vld [vmem:[%s5561_s5 + $0x2b8] sm:$0xff] }
 0x121   :  { %3303 = vmatpush3.bf16.msra.mxu0 %v3302_v6 }
 0x122   :  { %3323 = vmatpush3.bf16.msra.mxu1 %v3322_v41  ;;  %3305 = vmatprep.subr.bf16.mxu0 %v3304_v19  ;;  %v3344_v41 = vpack.c.bf16 %v2295_v40, %v2294_v39  ;;  %v3378_v19 = vpack.c.bf16 %v2311_v46, %v2310_v5  ;;  %v2315_v39 = vld [vmem:[%s5561_s5 + $0x328] sm:$0xff]  ;;  %v2288_v46 = vld [vmem:[%s5561_s5 + $0x250] sm:$0xff] }
 0x123   :  { %3325 = vmatprep.subr.bf16.mxu1 %v3324_v49 }
 0x125   :  { %3307 = vmatpush3.bf16.msra.mxu0 %v3306_v20 }
 0x126   :  { %3327 = vmatpush3.bf16.msra.mxu1 %v3326_v52  ;;  %3309 = vmatprep.subr.bf16.mxu0 %v3308_v29  ;;  %v2331_v29 = vld [vmem:[%s5561_s5 + $0x3a8] sm:$0xff] }
 0x127   :  { %3329 = vmatprep.subr.bf16.mxu1 %v3328_v61  ;;  %v3384_v37 = vpack.c.bf16 %v2331_v29, %v2330_v28  ;;  %v2340_v29 = vld [vmem:[%s5561_s5 + $0x3f0] sm:$0xff] }
 0x129   :  { %3311 = vmatpush3.bf16.msra.mxu0 %v3310_v32  ;;  %v2282_v32 = vld [vmem:[%s5561_s5 + $0x220] sm:$0xff] }
 0x12a   :  { %3331 = vmatpush3.bf16.msra.mxu1 %v3330_v0  ;;  %3345 = vmatprep.subr.bf16.mxu0 %v3344_v41  ;;  %v3354_v40 = vpack.c.bf16 %v2283_v33, %v2282_v32  ;;  %v2332_v41 = vld [vmem:[%s5561_s5 + $0x3b0] sm:$0xff]  ;;  %v2293_v33 = vld [vmem:[%s5561_s5 + $0x278] sm:$0xff] }
 0x12b   :  { %3333 = vmatprep.subr.bf16.mxu1 %v3332_v9  ;;  %v2297_v9 = vld [vmem:[%s5561_s5 + $0x298] sm:$0xff]  ;;  %v2292_v32 = vld [vmem:[%s5561_s5 + $0x270] sm:$0xff] }
 0x12c   :  { %v3348_v20 = vpack.c.bf16 %v2297_v9, %v2296_v8  ;;  %v2289_v8 = vld [vmem:[%s5561_s5 + $0x258] sm:$0xff] }
 0x12e   :  { %3335 = vmatpush3.bf16.msra.mxu1 %v3334_v14  ;;  %v2280_v14 = vld [vmem:[%s5561_s5 + $0x210] sm:$0xff] }
 0x12f   :  { %3337 = vmatprep.subr.bf16.mxu1 %v3336_v23  ;;  %v3350_v27 = vpack.c.bf16 %v2281_v16, %v2280_v14  ;;  %v2321_v14 = vld [vmem:[%s5561_s5 + $0x358] sm:$0xff]  ;;  %v3366_v16 = vpack.c.bf16 %v2289_v8, %v2288_v46  ;;  %v2357_v8 = vld [vmem:[%s5560_s4 + $0x100] sm:$0xff] }
 0x130   :  { %v3398_v22 = vpack.c.bf16 %v2321_v14, %v2320_v13  ;;  %v1187_v13 = vld [vmem:[%s5560_s4 + $0x10] sm:$0xff]  ;;  %v1188_v14 = vld [vmem:[%s5560_s4 + $0x18] sm:$0xff] }
 0x132   :  { %3339 = vmatpush3.bf16.msra.mxu1 %v3338_v26  ;;  %v2313_v26 = vld [vmem:[%s5561_s5 + $0x318] sm:$0xff] }
 0x133   :  { %3341 = vmatprep.subr.bf16.mxu1 %v3340_v35  ;;  %v3382_v34 = vpack.c.bf16 %v2313_v26, %v2312_v25  ;;  %v2300_v35 = vld [vmem:[%s5561_s5 + $0x2b0] sm:$0xff]  ;;  %v2322_v26 = vld [vmem:[%s5561_s5 + $0x360] sm:$0xff] }
 0x134   :  { %v3356_v43 = vpack.c.bf16 %v2301_v36, %v2300_v35  ;;  %v2343_v35 = vld [vmem:[%s5556_s0 + $0x68] sm:$0xff]  ;;  %v2345_v36 = vld [vmem:[%s5556_s0 + $0x78] sm:$0xff] }
 0x136   :  { %3343 = vmatpush3.bf16.msra.mxu1 %v3342_v38  ;;  %v2314_v38 = vld [vmem:[%s5561_s5 + $0x320] sm:$0xff] }
 0x137   :  { %3377 = vmatprep.subr.bf16.mxu1 %v3376_v44  ;;  %v2284_v44 = vld [vmem:[%s5561_s5 + $0x230] sm:$0xff] }
 0x1bd   :  { %v2596_v45 = vpop.f32.mrb[0].mxu1 }
 0x1be   :  { %v2597_v48 = vpop.f32.mrb[1].mxu1 }
 0x1bf   :  { %v2598_v49 = vadd.f32 %v2597_v48, %v2596_v45  ;;  %v2631_v50 = vpop.f32.mrb[2].mxu0  ;;  %v2285_v45 = vld [vmem:[%s5561_s5 + $0x238] sm:$0xff]  ;;  %v2302_v48 = vld [vmem:[%s5561_s5 + $0x2c0] sm:$0xff] }
 0x1c0   :  { %v2632_v51 = vpop.f32.mrb[3].mxu0 }
 0x1c1   :  { %v233_v52 = vadd.f32 %v2598_v49, %v27_v47  ;;  %v2633_v53 = vadd.f32 %v2632_v51, %v2631_v50  ;;  %v3386_v47 = vpack.c.bf16 %v2315_v39, %v2314_v38  ;;  %v2303_v49 = vld [vmem:[%s5561_s5 + $0x2c8] sm:$0xff]  ;;  %v3388_v50 = vpack.c.bf16 %v2333_v42, %v2332_v41  ;;  %v2316_v51 = vld [vmem:[%s5561_s5 + $0x330] sm:$0xff]  ;;  %v2325_v39 = vld [vmem:[%s5561_s5 + $0x378] sm:$0xff] }
 0x1c2   :  { %v2324_v38 = vld [vmem:[%s5561_s5 + $0x370] sm:$0xff]  ;;  %v3408_v41 = vpack.c.bf16 %v2345_v36, %v2343_v35  ;;  %v2342_v42 = vld [vmem:[%s5556_s0 + $0x60] sm:$0xff]  ;;  %v1208_v36 = vld [vmem:[%s5560_s4 + $0xb8] sm:$0xff] }
 0x1c3   :  { %v343_v54 = vadd.f32 %v2633_v53, %v233_v52  ;;  %v2317_v52 = vld [vmem:[%s5561_s5 + $0x338] sm:$0xff]  ;;  %v3358_v53 = vpack.c.bf16 %v2285_v45, %v2284_v44  ;;  %v3406_v44 = vpack.c.bf16 %v2325_v39, %v2324_v38  ;;  %v2347_v45 = vld [vmem:[%s5556_s0 + $0x88] sm:$0xff]  ;;  %v1207_v35 = vld [vmem:[%s5560_s4 + $0xb0] sm:$0xff] }
 0x1c4   :  { %v3434_v38 = vpack.c.bf16 %v1208_v36, %v1207_v35  ;;  %v1191_v39 = vld [vmem:[%s5560_s4 + $0x30] sm:$0xff]  ;;  %v2405_v36 = vld [vmem:[%s5560_s4 + $0x280] sm:$0xff] }
 0x1dd   :  { %v2666_v55 = vpop.f32.mrb[2].mxu1 }
 0x1de   :  { %v2667_v56 = vpop.f32.mrb[3].mxu1 }
 0x1df   :  { %v2668_v57 = vadd.f32 %v2667_v56, %v2666_v55  ;;  %v2701_v58 = vpop.f32.mrb[4].mxu0  ;;  %v2335_v55 = vld [vmem:[%s5561_s5 + $0x3c8] sm:$0xff]  ;;  %v3360_v56 = vpack.c.bf16 %v2303_v49, %v2302_v48 }
 0x1e0   :  { %v2702_v59 = vpop.f32.mrb[5].mxu0 }
 0x1e1   :  { %v451_v60 = vadd.f32 %v2668_v57, %v343_v54  ;;  %v2703_v61 = vadd.f32 %v2702_v59, %v2701_v58  ;;  %v2334_v54 = vld [vmem:[%s5561_s5 + $0x3c0] sm:$0xff]  ;;  %v2287_v58 = vld [vmem:[%s5561_s5 + $0x248] sm:$0xff]  ;;  %v3390_v59 = vpack.c.bf16 %v2317_v52, %v2316_v51  ;;  %v2348_v52 = vld [vmem:[%s5556_s0 + $0x90] sm:$0xff] }
 0x1e2   :  { %v2286_v57 = vld [vmem:[%s5561_s5 + $0x240] sm:$0xff] }
 0x1e3   :  { %v4468_v62 = vadd.f32 %v2703_v61, %v451_v60  ;;  %v2304_v60 = vld [vmem:[%s5561_s5 + $0x2d0] sm:$0xff]  ;;  %v2305_v61 = vld [vmem:[%s5561_s5 + $0x2d8] sm:$0xff]  ;;  %v2346_v51 = vld [vmem:[%s5556_s0 + $0x80] sm:$0xff] }
 0x1e4   :  { %v3364_v5 = vpack.c.bf16 %v2305_v61, %v2304_v60  ;;  %v1201_v61 = vld [vmem:[%s5560_s4 + $0x80] sm:$0xff] }
 0x1e9   :  { %v644_v63 = vpop.f32.mrb[4].mxu1 }
 0x1ea   :  { %v645_v0 = vadd.f32 %v644_v63, %v4028_v1  ;;  %v646_v2 = vpop.f32.mrb[5].mxu1  ;;  %v3392_v63 = vpack.c.bf16 %v2335_v55, %v2334_v54  ;;  %v2353_v54 = vld [vmem:[%s5556_s0 + $0xb8] sm:$0x1f] }
 0x1eb   :  { %v647_v4 = vadd.f32 %v646_v2, %v4028_v1  ;;  %v3346_v1 = vpack.c.bf16 %v2279_v3, %v2278_v10  ;;  %v2319_v2 = vld [vmem:[%s5561_s5 + $0x348] sm:$0xff]  ;;  %v3362_v10 = vpack.c.bf16 %v2287_v58, %v2286_v57  ;;  %v2336_v3 = vld [vmem:[%s5561_s5 + $0x3d0] sm:$0xff]  ;;  %v2350_v58 = vld [vmem:[%s5556_s0 + $0xa0] sm:$0xff] }
 0x1ec   :  { %v4481_v6 = vmax.f32 %v645_v0, 0.0  ;;  %v2318_v0 = vld [vmem:[%s5561_s5 + $0x340] sm:$0xff] }
 0x1ed   :  { %v650_v11 = vmax.f32 %v647_v4, 0.0  ;;  %v2337_v4 = vld [vmem:[%s5561_s5 + $0x3d8] sm:$0xff]  ;;  %v3394_v9 = vpack.c.bf16 %v2319_v2, %v2318_v0  ;;  %v1185_v0 = vld [vmem:[%s5560_s4] sm:$0xff] }
 0x1ee   :  { %v789_v23 = vrot.slane %v4481_v6, 1  ;;  %v3396_v12 = vpack.c.bf16 %v2337_v4, %v2336_v3  ;;  %v897_v49 = vrot.slane %v4481_v6, 2  ;;  %v1005_v55 = vrot.slane %v4481_v6, 3  ;;  %v2373_v3 = vld [vmem:[%s5560_s4 + $0x180] sm:$0xff]  ;;  %v2374_v4 = vld [vmem:[%s5560_s4 + $0x188] sm:$0xff] }
 0x1ef   :  { %747 = vmatprep.mubr.f32.mxu0 %v650_v11  ;;  %v790_v17 = vrot.slane %v650_v11, 1  ;;  %v898_v18 = vrot.slane %v650_v11, 2  ;;  %v1006_v30 = vrot.slane %v650_v11, 3  ;;  %v2306_v11 = vld [vmem:[%s5561_s5 + $0x2e0] sm:$0xff]  ;;  %v3454_v46 = vpack.c.bf16 %v2374_v4, %v2373_v3  ;;  %v2383_v4 = vld [vmem:[%s5560_s4 + $0x1d0] sm:$0xff] }
 0x1f0   :  { %748 = vmatmul.mubr.f32.vlgmr.msra.gmra.mrb[6].mxu0 %v4481_v6  ;;  %v4702_v6 = vld [vmem:[%s5558_s2] sm:$0xf] }
 0x1f1   :  { %3347 = vmatpush3.bf16.msra.mxu0 %v3346_v1  ;;  %857 = vmatprep.mubr.f32.mxu1 %v790_v17  ;;  %v2307_v1 = vld [vmem:[%s5561_s5 + $0x2e8] sm:$0xff]  ;;  %v2338_v17 = vld [vmem:[%s5561_s5 + $0x3e0] sm:$0xff] }
 0x1f2   :  { %965 = vmatprep.mubr.f32.mxu0 %v898_v18  ;;  %858 = vmatmul.mubr.f32.vlgmr.msra.gmra.mrb[6].mxu1 %v789_v23  ;;  %v2339_v18 = vld [vmem:[%s5561_s5 + $0x3e8] sm:$0xff]  ;;  %v2308_v23 = vld [vmem:[%s5561_s5 + $0x2f0] sm:$0xff] }
 0x1f3   :  { %3379 = vmatpush3.bf16.msra.mxu1 %v3378_v19  ;;  %3349 = vmatprep.subr.bf16.mxu0 %v3348_v20  ;;  %v3368_v19 = vpack.c.bf16 %v2307_v1, %v2306_v11  ;;  %v2290_v20 = vld [vmem:[%s5561_s5 + $0x260] sm:$0xff]  ;;  %v3400_v25 = vpack.c.bf16 %v2339_v18, %v2338_v17  ;;  %v1203_v11 = vld [vmem:[%s5560_s4 + $0x90] sm:$0xff]  ;;  %v3428_v17 = vpack.c.bf16 %v1188_v14, %v1187_v13  ;;  %v1198_v14 = vld [vmem:[%s5560_s4 + $0x68] sm:$0xff] }
 0x1f4   :  { %1073 = vmatprep.mubr.f32.mxu1 %v1006_v30  ;;  %3381 = vmatprep.subr.bf16.mxu1 %v3380_v24  ;;  %v2309_v24 = vld [vmem:[%s5561_s5 + $0x2f8] sm:$0xff]  ;;  %v3370_v28 = vpack.c.bf16 %v2291_v21, %v2290_v20  ;;  %v2375_v18 = vld [vmem:[%s5560_s4 + $0x190] sm:$0xff]  ;;  %v1197_v13 = vld [vmem:[%s5560_s4 + $0x60] sm:$0xff] }
 0x1f5   :  { %3351 = vmatpush3.bf16.msra.mxu0 %v3350_v27  ;;  %v2323_v27 = vld [vmem:[%s5561_s5 + $0x368] sm:$0xff]  ;;  %v2341_v30 = vld [vmem:[%s5561_s5 + $0x3f8] sm:$0xff]  ;;  %v2359_v20 = vld [vmem:[%s5560_s4 + $0x110] sm:$0xff] }
 0x1f6   :  { %3353 = vmatprep.subr.bf16.mxu0 %v3352_v31  ;;  %v3372_v31 = vpack.c.bf16 %v2309_v24, %v2308_v23  ;;  %v1205_v23 = vld [vmem:[%s5560_s4 + $0xa0] sm:$0xff]  ;;  %v1206_v24 = vld [vmem:[%s5560_s4 + $0xa8] sm:$0xff] }
 0x1f7   :  { %3383 = vmatpush3.bf16.msra.mxu1 %v3382_v34  ;;  %v3402_v34 = vpack.c.bf16 %v2323_v27, %v2322_v26  ;;  %v3430_v26 = vpack.c.bf16 %v1206_v24, %v1205_v23  ;;  %v1189_v27 = vld [vmem:[%s5560_s4 + $0x20] sm:$0xff]  ;;  %v1215_v24 = vld [vmem:[%s5560_s4 + $0xf0] sm:$0xff] }
 0x1f8   :  { %3385 = vmatprep.subr.bf16.mxu1 %v3384_v37  ;;  %v3404_v37 = vpack.c.bf16 %v2341_v30, %v2340_v29  ;;  %v2377_v29 = vld [vmem:[%s5560_s4 + $0x1a0] sm:$0xff]  ;;  %v2378_v30 = vld [vmem:[%s5560_s4 + $0x1a8] sm:$0xff] }
 0x1f9   :  { %3355 = vmatpush3.bf16.msra.mxu0 %v3354_v40  ;;  %v3374_v40 = vpack.c.bf16 %v2293_v33, %v2292_v32  ;;  %v2362_v32 = vld [vmem:[%s5560_s4 + $0x128] sm:$0xff] }
 0x1fa   :  { %3357 = vmatprep.subr.bf16.mxu0 %v3356_v43  ;;  %v2344_v43 = vld [vmem:[%s5556_s0 + $0x70] sm:$0xff] }
 0x1fb   :  { %3387 = vmatpush3.bf16.msra.mxu1 %v3386_v47  ;;  %v2349_v47 = vld [vmem:[%s5556_s0 + $0x98] sm:$0xff]  ;;  %v3410_v48 = vpack.c.bf16 %v2344_v43, %v2342_v42  ;;  %v2379_v42 = vld [vmem:[%s5560_s4 + $0x1b0] sm:$0xff] }
 0x1fc   :  { %3389 = vmatprep.subr.bf16.mxu1 %v3388_v50  ;;  %v3412_v50 = vpack.c.bf16 %v2349_v47, %v2347_v45  ;;  %v2380_v43 = vld [vmem:[%s5560_s4 + $0x1b8] sm:$0xff]  ;;  %v2363_v45 = vld [vmem:[%s5560_s4 + $0x130] sm:$0xff] }
 0x1fd   :  { %3359 = vmatpush3.bf16.msra.mxu0 %v3358_v53  ;;  %v2351_v53 = vld [vmem:[%s5556_s0 + $0xa8] sm:$0xff]  ;;  %v2364_v47 = vld [vmem:[%s5560_s4 + $0x138] sm:$0xff] }
 0x1fe   :  { %3361 = vmatprep.subr.bf16.mxu0 %v3360_v56  ;;  %v3414_v56 = vpack.c.bf16 %v2348_v52, %v2346_v51  ;;  %v3416_v57 = vpack.c.bf16 %v2353_v54, %v2351_v53  ;;  %v1193_v52 = vld [vmem:[%s5560_s4 + $0x40] sm:$0xff]  ;;  %v1194_v53 = vld [vmem:[%s5560_s4 + $0x48] sm:$0xff] }
 0x1ff   :  { %3391 = vmatpush3.bf16.msra.mxu1 %v3390_v59  ;;  %v2352_v59 = vld [vmem:[%s5556_s0 + $0xb0] sm:$0x1f]  ;;  %v3440_v54 = vpack.c.bf16 %v1194_v53, %v1193_v52 }
 0x200   :  { %3393 = vmatprep.subr.bf16.mxu1 %v3392_v63  ;;  %v3419_v60 = vpack.c.bf16 %v2352_v59, %v2350_v58  ;;  %v1202_v63 = vld [vmem:[%s5560_s4 + $0x88] sm:$0xff]  ;;  %v2365_v58 = vld [vmem:[%s5560_s4 + $0x140] sm:$0xff] }
 0x201   :  { %3363 = vmatpush3.bf16.msra.mxu0 %v3362_v10  ;;  %v3422_v2 = vpack.c.bf16 %v1202_v63, %v1201_v61  ;;  %v1186_v10 = vld [vmem:[%s5560_s4 + $0x8] sm:$0xff]  ;;  %v1211_v61 = vld [vmem:[%s5560_s4 + $0xd0] sm:$0xff]  ;;  %v1212_v63 = vld [vmem:[%s5560_s4 + $0xd8] sm:$0xff] }
 0x202   :  { %3365 = vmatprep.subr.bf16.mxu0 %v3364_v5  ;;  %v3424_v5 = vpack.c.bf16 %v1186_v10, %v1185_v0  ;;  %v2366_v59 = vld [vmem:[%s5560_s4 + $0x148] sm:$0xff]  ;;  %v3442_v0 = vpack.c.bf16 %v1212_v63, %v1211_v61  ;;  %v1196_v10 = vld [vmem:[%s5560_s4 + $0x58] sm:$0xff] }
 0x203   :  { %3395 = vmatpush3.bf16.msra.mxu1 %v3394_v9  ;;  %v2358_v9 = vld [vmem:[%s5560_s4 + $0x108] sm:$0xff] }
 0x204   :  { %3397 = vmatprep.subr.bf16.mxu1 %v3396_v12  ;;  %v3456_v1 = vpack.c.bf16 %v2358_v9, %v2357_v8  ;;  %v1204_v12 = vld [vmem:[%s5560_s4 + $0x98] sm:$0xff]  ;;  %v2367_v8 = vld [vmem:[%s5560_s4 + $0x150] sm:$0xff] }
 0x205   :  { %3367 = vmatpush3.bf16.msra.mxu0 %v3366_v16  ;;  %v3426_v16 = vpack.c.bf16 %v1204_v12, %v1203_v11  ;;  %v2368_v9 = vld [vmem:[%s5560_s4 + $0x158] sm:$0xff]  ;;  %v1213_v11 = vld [vmem:[%s5560_s4 + $0xe0] sm:$0xff]  ;;  %v1214_v12 = vld [vmem:[%s5560_s4 + $0xe8] sm:$0xff] }
 0x206   :  { %3369 = vmatprep.subr.bf16.mxu0 %v3368_v19  ;;  %v2376_v19 = vld [vmem:[%s5560_s4 + $0x198] sm:$0xff] }
 0x207   :  { %3399 = vmatpush3.bf16.msra.mxu1 %v3398_v22  ;;  %v3458_v21 = vpack.c.bf16 %v2376_v19, %v2375_v18  ;;  %v2360_v22 = vld [vmem:[%s5560_s4 + $0x118] sm:$0xff]  ;;  %v2385_v18 = vld [vmem:[%s5560_s4 + $0x1e0] sm:$0xff]  ;;  %v2386_v19 = vld [vmem:[%s5560_s4 + $0x1e8] sm:$0xff] }
 0x208   :  { %3401 = vmatprep.subr.bf16.mxu1 %v3400_v25  ;;  %v3460_v25 = vpack.c.bf16 %v2360_v22, %v2359_v20  ;;  %v3478_v20 = vpack.c.bf16 %v2386_v19, %v2385_v18  ;;  %v2370_v22 = vld [vmem:[%s5560_s4 + $0x168] sm:$0xff]  ;;  %v2409_v19 = vld [vmem:[%s5560_s4 + $0x2a0] sm:$0xff] }
 0x209   :  { %3371 = vmatpush3.bf16.msra.mxu0 %v3370_v28  ;;  %v1190_v28 = vld [vmem:[%s5560_s4 + $0x28] sm:$0xff] }
 0x20a   :  { %3373 = vmatprep.subr.bf16.mxu0 %v3372_v31  ;;  %v2361_v31 = vld [vmem:[%s5560_s4 + $0x120] sm:$0xff]  ;;  %v3432_v33 = vpack.c.bf16 %v1190_v28, %v1189_v27  ;;  %v1199_v27 = vld [vmem:[%s5560_s4 + $0x70] sm:$0xff]  ;;  %v1200_v28 = vld [vmem:[%s5560_s4 + $0x78] sm:$0xff] }
 0x20b   :  { %3403 = vmatpush3.bf16.msra.mxu1 %v3402_v34  ;;  %v3462_v34 = vpack.c.bf16 %v2378_v30, %v2377_v29  ;;  %v3452_v29 = vpack.c.bf16 %v1200_v28, %v1199_v27  ;;  %v2387_v30 = vld [vmem:[%s5560_s4 + $0x1f0] sm:$0xff]  ;;  %v2442_v27 = vld [vmem:[%s5560_s4 + $0x3a8] sm:$0xff] }
 0x20c   :  { %3405 = vmatprep.subr.bf16.mxu1 %v3404_v37  ;;  %v3464_v37 = vpack.c.bf16 %v2362_v32, %v2361_v31  ;;  %v2388_v31 = vld [vmem:[%s5560_s4 + $0x1f8] sm:$0xff] }
 0x20d   :  { %3375 = vmatpush3.bf16.msra.mxu0 %v3374_v40  ;;  %v1192_v40 = vld [vmem:[%s5560_s4 + $0x38] sm:$0xff]  ;;  %v3482_v32 = vpack.c.bf16 %v2388_v31, %v2387_v30  ;;  %v2393_v30 = vld [vmem:[%s5560_s4 + $0x220] sm:$0xff]  ;;  %v2394_v31 = vld [vmem:[%s5560_s4 + $0x228] sm:$0xff] }
 0x20e   :  { %3409 = vmatprep.subr.bf16.mxu0 %v3408_v41  ;;  %v3436_v41 = vpack.c.bf16 %v1192_v40, %v1191_v39  ;;  %v2437_v39 = vld [vmem:[%s5560_s4 + $0x380] sm:$0xff]  ;;  %v2438_v40 = vld [vmem:[%s5560_s4 + $0x388] sm:$0xff] }
 0x20f   :  { %3407 = vmatpush3.bf16.msra.mxu1 %v3406_v44  ;;  %v3466_v44 = vpack.c.bf16 %v2380_v43, %v2379_v42 }
 0x210   :  { %966 = vmatmul.mubr.f32.vlgmr.msra.gmra.mrb[8].mxu0 %v897_v49  ;;  %3423 = vmatprep.subr.bf16.mxu1 %v3422_v2  ;;  %v1209_v49 = vld [vmem:[%s5560_s4 + $0xc0] sm:$0xff]  ;;  %v1195_v2 = vld [vmem:[%s5560_s4 + $0x50] sm:$0xff] }
 0x211   :  { %3411 = vmatpush1.bf16.msra.mxu0 %v3410_v48  ;;  %1176 = vmatprep.mubr.f32.mxu0 %v3721_v7  ;;  %v3468_v48 = vpack.c.bf16 %v2364_v47, %v2363_v45  ;;  %v3444_v3 = vpack.c.bf16 %v1196_v10, %v1195_v2  ;;  %v2421_v10 = vld [vmem:[%s5560_s4 + $0x300] sm:$0xff] }
 0x212   :  { %1074 = vmatmul.mubr.f32.vlgmr.msra.gmra.mrb[8].mxu1 %v1005_v55  ;;  %3413 = vmatprep.subr.bf16.mxu0 %v3412_v50  ;;  %v1210_v50 = vld [vmem:[%s5560_s4 + $0xc8] sm:$0xff]  ;;  %v2381_v55 = vld [vmem:[%s5560_s4 + $0x1c0] sm:$0xff] }
 0x213   :  { %3425 = vmatpush3.bf16.msra.mxu1 %v3424_v5  ;;  %v3438_v51 = vpack.c.bf16 %v1210_v50, %v1209_v49  ;;  %v2384_v5 = vld [vmem:[%s5560_s4 + $0x1d8] sm:$0xff] }
 0x214   :  { %3427 = vmatprep.subr.bf16.mxu1 %v3426_v16  ;;  %v3446_v16 = vpack.c.bf16 %v1214_v12, %v1213_v11  ;;  %v2439_v11 = vld [vmem:[%s5560_s4 + $0x390] sm:$0xff] }
 0x215   :  { %3415 = vmatpush1.bf16.msra.mxu0 %v3414_v56  ;;  %v2382_v56 = vld [vmem:[%s5560_s4 + $0x1c8] sm:$0xff]  ;;  %v2391_v12 = vld [vmem:[%s5560_s4 + $0x210] sm:$0xff] }
 0x216   :  { %3418 = vmatprep.subr.msk.bf16.mxu0 %vm3797_vm2, %v3416_v57  ;;  %v3470_v57 = vpack.c.bf16 %v2382_v56, %v2381_v55 }
 0x217   :  { %3429 = vmatpush3.bf16.msra.mxu1 %v3428_v17  ;;  %v3448_v17 = vpack.c.bf16 %v1198_v14, %v1197_v13  ;;  %v2392_v13 = vld [vmem:[%s5560_s4 + $0x218] sm:$0xff] }
 0x218   :  { %3431 = vmatprep.subr.bf16.mxu1 %v3430_v26 }
 0x219   :  { %3421 = vmatpush1.bf16.msk.msra.mxu0 %vm3797_vm2, %v3419_v60  ;;  %v3472_v60 = vpack.c.bf16 %v2366_v59, %v2365_v58  ;;  %v4912_v59 = vpop.permute.xlu0 %1100 }
 0x21a   :  { %3455 = vmatprep.subr.bf16.mxu0 %v3454_v46  ;;  %v3474_v46 = vpack.c.bf16 %v2384_v5, %v2383_v4  ;;  %v2422_v4 = vld [vmem:[%s5560_s4 + $0x308] sm:$0xff]  ;;  %v2407_v5 = vld [vmem:[%s5560_s4 + $0x290] sm:$0xff] }
 0x21b   :  { %3433 = vmatpush3.bf16.msra.mxu1 %v3432_v33  ;;  %v2371_v33 = vld [vmem:[%s5560_s4 + $0x170] sm:$0xff] }
 0x21c   :  { %2356 = vmatmul.mubr.msk.f32.vlgmr.msra.gmra.mrb[10].mxu0 %vm47_vm3, %v4702_v6  ;;  %3435 = vmatprep.subr.bf16.mxu1 %v3434_v38 }
 0x21d   :  { %3457 = vmatpush3.bf16.msra.mxu0 %v3456_v1  ;;  %v3476_v1 = vpack.c.bf16 %v2368_v9, %v2367_v8 }
 0x21e   :  { %3459 = vmatprep.subr.bf16.mxu0 %v3458_v21  ;;  %v2369_v21 = vld [vmem:[%s5560_s4 + $0x160] sm:$0xff] }
 0x21f   :  { %3437 = vmatpush3.bf16.msra.mxu1 %v3436_v41  ;;  %v3480_v23 = vpack.c.bf16 %v2370_v22, %v2369_v21  ;;  %v3518_v41 = vpack.c.bf16 %v2438_v40, %v2437_v39  ;;  %v2443_v39 = vld [vmem:[%s5560_s4 + $0x3b0] sm:$0xff]  ;;  %v2444_v40 = vld [vmem:[%s5560_s4 + $0x3b8] sm:$0xff] }
 0x220   :  { %3439 = vmatprep.subr.bf16.mxu1 %v3438_v51 }
 0x221   :  { %3461 = vmatpush3.bf16.msra.mxu0 %v3460_v25  ;;  %v1216_v25 = vld [vmem:[%s5560_s4 + $0xf8] sm:$0xff] }
 0x222   :  { %3463 = vmatprep.subr.bf16.mxu0 %v3462_v34  ;;  %v3450_v26 = vpack.c.bf16 %v1216_v25, %v1215_v24  ;;  %v2372_v34 = vld [vmem:[%s5560_s4 + $0x178] sm:$0xff]  ;;  %v3492_v25 = vpack.c.bf16 %v2392_v13, %v2391_v12  ;;  %v2431_v12 = vld [vmem:[%s5560_s4 + $0x350] sm:$0xff] }
 0x223   :  { %3441 = vmatpush3.bf16.msra.mxu1 %v3440_v54  ;;  %v3484_v35 = vpack.c.bf16 %v2372_v34, %v2371_v33  ;;  %v2424_v24 = vld [vmem:[%s5560_s4 + $0x318] sm:$0xff]  ;;  %v2411_v33 = vld [vmem:[%s5560_s4 + $0x2b0] sm:$0xff] }
 0x224   :  { %3443 = vmatprep.subr.bf16.mxu1 %v3442_v0  ;;  %v2390_v0 = vld [vmem:[%s5560_s4 + $0x208] sm:$0xff]  ;;  %v2412_v34 = vld [vmem:[%s5560_s4 + $0x2b8] sm:$0xff] }
 0x225   :  { %3465 = vmatpush3.bf16.msra.mxu0 %v3464_v37  ;;  %v2406_v37 = vld [vmem:[%s5560_s4 + $0x288] sm:$0xff]  ;;  %v2432_v13 = vld [vmem:[%s5560_s4 + $0x358] sm:$0xff] }
 0x226   :  { %3467 = vmatprep.subr.bf16.mxu0 %v3466_v44  ;;  %v3486_v38 = vpack.c.bf16 %v2406_v37, %v2405_v36  ;;  %v2425_v36 = vld [vmem:[%s5560_s4 + $0x320] sm:$0xff]  ;;  %v2426_v37 = vld [vmem:[%s5560_s4 + $0x328] sm:$0xff] }
 0x227   :  { %3445 = vmatpush3.bf16.msra.mxu1 %v3444_v3 }
 0x228   :  { %3447 = vmatprep.subr.bf16.mxu1 %v3446_v16 }
 0x229   :  { %3469 = vmatpush3.bf16.msra.mxu0 %v3468_v48 }
 0x22a   :  { %3471 = vmatprep.subr.bf16.mxu0 %v3470_v57 }
 0x22b   :  { %3449 = vmatpush3.bf16.msra.mxu1 %v3448_v17  ;;  %v3520_v17 = vpack.c.bf16 %v2422_v4, %v2421_v10  ;;  %v2448_v10 = vld [vmem:[%s5560_s4 + $0x3d8] sm:$0xff] }
 0x22c   :  { %3451 = vmatprep.subr.bf16.mxu1 %v3450_v26  ;;  %v2441_v26 = vld [vmem:[%s5560_s4 + $0x3a0] sm:$0xff] }
 0x22d   :  { %3473 = vmatpush3.bf16.msra.mxu0 %v3472_v60 }
 0x22e   :  { %3475 = vmatprep.subr.bf16.mxu0 %v3474_v46  ;;  %v2408_v46 = vld [vmem:[%s5560_s4 + $0x298] sm:$0xff] }
 0x22f   :  { %3453 = vmatpush3.bf16.msra.mxu1 %v3452_v29  ;;  %v3490_v18 = vpack.c.bf16 %v2408_v46, %v2407_v5  ;;  %v2399_v5 = vld [vmem:[%s5560_s4 + $0x250] sm:$0xff]  ;;  %v2400_v46 = vld [vmem:[%s5560_s4 + $0x258] sm:$0xff] }
 0x230   :  { %3487 = vmatprep.subr.bf16.mxu1 %v3486_v38  ;;  %v3496_v38 = vpack.c.bf16 %v2394_v31, %v2393_v30  ;;  %v2403_v31 = vld [vmem:[%s5560_s4 + $0x270] sm:$0xff] }
 0x231   :  { %3477 = vmatpush3.bf16.msra.mxu0 %v3476_v1  ;;  %v2440_v1 = vld [vmem:[%s5560_s4 + $0x398] sm:$0xff] }
 0x232   :  { %3479 = vmatprep.subr.bf16.mxu0 %v3478_v20  ;;  %v2410_v20 = vld [vmem:[%s5560_s4 + $0x2a8] sm:$0xff]  ;;  %v3522_v22 = vpack.c.bf16 %v2440_v1, %v2439_v11 }
 0x233   :  { %v3494_v29 = vpack.c.bf16 %v2410_v20, %v2409_v19  ;;  %v2418_v11 = vld [vmem:[%s5560_s4 + $0x2e8] sm:$0xff]  ;;  %v2401_v19 = vld [vmem:[%s5560_s4 + $0x260] sm:$0xff] }
 0x234   :  { %v2402_v20 = vld [vmem:[%s5560_s4 + $0x268] sm:$0xff] }
 0x235   :  { %3481 = vmatpush3.bf16.msra.mxu0 %v3480_v23  ;;  %v2423_v23 = vld [vmem:[%s5560_s4 + $0x310] sm:$0xff] }
 0x236   :  { %3483 = vmatprep.subr.bf16.mxu0 %v3482_v32  ;;  %v3524_v32 = vpack.c.bf16 %v2424_v24, %v2423_v23  ;;  %v2420_v23 = vld [vmem:[%s5560_s4 + $0x2f8] sm:$0xff] }
 0x239   :  { %3485 = vmatpush3.bf16.msra.mxu0 %v3484_v35  ;;  %v3526_v35 = vpack.c.bf16 %v2442_v27, %v2441_v26  ;;  %v2434_v26 = vld [vmem:[%s5560_s4 + $0x368] sm:$0xff]  ;;  %v3512_v27 = vpack.c.bf16 %v2402_v20, %v2401_v19  ;;  %v1723_v19 = vld [vmem:[%s5561_s5 + $0xa0] sm:$0xff] }
 0x23a   :  { %3519 = vmatprep.subr.bf16.mxu0 %v3518_v41  ;;  %v3498_v41 = vpack.c.bf16 %v2412_v34, %v2411_v33  ;;  %v2454_v34 = vld [vmem:[%s5557_s1 + $0x68] sm:$0xff] }
 0x23b   :  { %v1724_v20 = vld [vmem:[%s5561_s5 + $0xa8] sm:$0xff] }
 0x2c3   :  { %v2736_v42 = vpop.f32.mrb[6].mxu0 }
 0x2c4   :  { %v2737_v43 = vpop.f32.mrb[7].mxu0 }
 0x2c5   :  { %v2738_v44 = vadd.f32 %v2737_v43, %v2736_v42  ;;  %v2771_v45 = vpop.f32.mrb[6].mxu1  ;;  %v2395_v42 = vld [vmem:[%s5560_s4 + $0x230] sm:$0xff]  ;;  %v2396_v43 = vld [vmem:[%s5560_s4 + $0x238] sm:$0xff] }
 0x2c6   :  { %v2772_v47 = vpop.f32.mrb[7].mxu1 }
 0x2c7   :  { %v753_v48 = vadd.f32 %v2738_v44, %v4468_v62  ;;  %v2773_v49 = vadd.f32 %v2772_v47, %v2771_v45  ;;  %v2389_v62 = vld [vmem:[%s5560_s4 + $0x200] sm:$0xff]  ;;  %v3528_v44 = vpack.c.bf16 %v2426_v37, %v2425_v36  ;;  %v2414_v47 = vld [vmem:[%s5560_s4 + $0x2c8] sm:$0xff]  ;;  %v2435_v37 = vld [vmem:[%s5560_s4 + $0x370] sm:$0xff] }
 0x2c8   :  { %v3488_v9 = vpack.c.bf16 %v2390_v0, %v2389_v62  ;;  %v2413_v45 = vld [vmem:[%s5560_s4 + $0x2c0] sm:$0xff]  ;;  %v2430_v62 = vld [vmem:[%s5560_s4 + $0x348] sm:$0xff] }
 0x2c9   :  { %v863_v50 = vadd.f32 %v2773_v49, %v753_v48  ;;  %v3530_v48 = vpack.c.bf16 %v2444_v40, %v2443_v39  ;;  %v2427_v49 = vld [vmem:[%s5560_s4 + $0x330] sm:$0xff] }
 0x2e3   :  { %v2806_v51 = vpop.f32.mrb[8].mxu0 }
 0x2e4   :  { %v2807_v52 = vpop.f32.mrb[9].mxu0 }
 0x2e5   :  { %v2808_v53 = vadd.f32 %v2807_v52, %v2806_v51  ;;  %v2841_v54 = vpop.f32.mrb[8].mxu1  ;;  %v3500_v51 = vpack.c.bf16 %v2396_v43, %v2395_v42  ;;  %v2445_v52 = vld [vmem:[%s5560_s4 + $0x3c0] sm:$0xff]  ;;  %v2455_v42 = vld [vmem:[%s5557_s1 + $0x70] sm:$0xff] }
 0x2e6   :  { %v2842_v55 = vpop.f32.mrb[9].mxu1 }
 0x2e7   :  { %v971_v56 = vadd.f32 %v2808_v53, %v863_v50  ;;  %v2843_v57 = vadd.f32 %v2842_v55, %v2841_v54  ;;  %v2428_v50 = vld [vmem:[%s5560_s4 + $0x338] sm:$0xff]  ;;  %v2446_v53 = vld [vmem:[%s5560_s4 + $0x3c8] sm:$0xff]  ;;  %v3502_v54 = vpack.c.bf16 %v2414_v47, %v2413_v45  ;;  %v2397_v55 = vld [vmem:[%s5560_s4 + $0x240] sm:$0xff] }
 0x2e8   :  { %v2460_v45 = vld [vmem:[%s5557_s1 + $0x98] sm:$0xff] }
 0x2e9   :  { %v1079_v58 = vadd.f32 %v2843_v57, %v971_v56  ;;  %v2398_v56 = vld [vmem:[%s5560_s4 + $0x248] sm:$0xff]  ;;  %v3532_v57 = vpack.c.bf16 %v2428_v50, %v2427_v49  ;;  %v2457_v50 = vld [vmem:[%s5557_s1 + $0x80] sm:$0xff] }
 0x2ea   :  { %v3504_v0 = vpack.c.bf16 %v2398_v56, %v2397_v55 }
 0x2eb   :  { %1081 = vst.msk [vmem:[#allocation2] sm:$0x1] %vm1080_vm4, %v1079_v58  ;;  %v2415_v58 = vld [vmem:[%s5560_s4 + $0x2d0] sm:$0xff] }
 0x2ef   :  { %v1178_v60 = vpop.f32.mrb[10].mxu0 }
 0x2f0   :  { %v1179_v61 = vadd.f32 %v1178_v60, %v4912_v59  ;;  %v1180_v63 = vpop.f32.mrb[11].mxu0  ;;  %v2416_v60 = vld [vmem:[%s5560_s4 + $0x2d8] sm:$0xff] }
 0x2f1   :  { %v1181_v2 = vadd.f32 %v1180_v63, %v4912_v59  ;;  %v2429_v63 = vld [vmem:[%s5560_s4 + $0x340] sm:$0xff]  ;;  %v3506_v4 = vpack.c.bf16 %v2416_v60, %v2415_v58  ;;  %v2463_v58 = vld [vmem:[%s5557_s1 + $0xb0] sm:$0x1f] }
 0x2f2   :  { %v4925_v3 = vmax.f32 %v1179_v61, 0.0  ;;  %v3534_v61 = vpack.c.bf16 %v2446_v53, %v2445_v52  ;;  %v2462_v52 = vld [vmem:[%s5557_s1 + $0xa8] sm:$0xff]  ;;  %v2464_v53 = vld [vmem:[%s5557_s1 + $0xb8] sm:$0x1f] }
 0x2f3   :  { %v1184_v8 = vmax.f32 %v1181_v2, 0.0  ;;  %v2447_v2 = vld [vmem:[%s5560_s4 + $0x3d0] sm:$0xff]  ;;  %v3558_v56 = vpack.c.bf16 %v2464_v53, %v2462_v52  ;;  %v2493_v52 = vld [vmem:[%s5561_s5 + $0x1c8] sm:$0xff] }
 0x2f4   :  { %v1322_v21 = vrot.slane %v4925_v3, 1  ;;  %v3538_v1 = vpack.c.bf16 %v2448_v10, %v2447_v2  ;;  %v2468_v10 = vld [vmem:[%s5561_s5 + $0x100] sm:$0xff] }
 0x2f5   :  { %1281 = vmatprep.mubr.f32.mxu1 %v1184_v8  ;;  %v1323_v14 = vrot.slane %v1184_v8, 1  ;;  %v1430_v16 = vrot.slane %v1184_v8, 2  ;;  %v1537_v28 = vrot.slane %v1184_v8, 3  ;;  %v3536_v8 = vpack.c.bf16 %v2430_v62, %v2429_v63  ;;  %v2485_v62 = vld [vmem:[%s5561_s5 + $0x188] sm:$0xff] }
 0x2f6   :  { %1282 = vmatmul.mubr.f32.vlgmr.msra.gmra.mrb[10].mxu1 %v4925_v3 }
 0x2f7   :  { %3489 = vmatpush3.bf16.msra.mxu1 %v3488_v9  ;;  %1390 = vmatprep.mubr.f32.mxu0 %v1323_v14  ;;  %v2417_v9 = vld [vmem:[%s5560_s4 + $0x2e0] sm:$0xff]  ;;  %v3508_v14 = vpack.c.bf16 %v2400_v46, %v2399_v5  ;;  %v1721_v5 = vld [vmem:[%s5561_s5 + $0x90] sm:$0xff] }
 0x2f8   :  { %1497 = vmatprep.mubr.f32.mxu1 %v1430_v16  ;;  %1391 = vmatmul.mubr.f32.vlgmr.msra.gmra.mrb[12].mxu0 %v1322_v21  ;;  %v2449_v16 = vld [vmem:[%s5560_s4 + $0x3e0] sm:$0xff]  ;;  %v3540_v21 = vpack.c.bf16 %v2432_v13, %v2431_v12  ;;  %v2486_v13 = vld [vmem:[%s5561_s5 + $0x190] sm:$0xff] }
 0x2f9   :  { %3521 = vmatpush3.bf16.msra.mxu0 %v3520_v17  ;;  %3491 = vmatprep.subr.bf16.mxu1 %v3490_v18  ;;  %v2450_v17 = vld [vmem:[%s5560_s4 + $0x3e8] sm:$0xff]  ;;  %v3510_v18 = vpack.c.bf16 %v2418_v11, %v2417_v9  ;;  %v1705_v9 = vld [vmem:[%s5561_s5 + $0x10] sm:$0xff]  ;;  %v1706_v11 = vld [vmem:[%s5561_s5 + $0x18] sm:$0xff] }
 0x2fa   :  { %1604 = vmatprep.mubr.f32.mxu0 %v1537_v28  ;;  %3523 = vmatprep.subr.bf16.mxu0 %v3522_v22  ;;  %v2419_v22 = vld [vmem:[%s5560_s4 + $0x2f0] sm:$0xff]  ;;  %v3542_v24 = vpack.c.bf16 %v2450_v17, %v2449_v16  ;;  %v3570_v12 = vpack.c.bf16 %v1706_v11, %v1705_v9  ;;  %v2496_v11 = vld [vmem:[%s5561_s5 + $0x1e0] sm:$0xff] }
 0x2fb   :  { %3493 = vmatpush3.bf16.msra.mxu1 %v3492_v25  ;;  %v2433_v25 = vld [vmem:[%s5560_s4 + $0x360] sm:$0xff]  ;;  %v2451_v28 = vld [vmem:[%s5560_s4 + $0x3f0] sm:$0xff]  ;;  %v3514_v30 = vpack.c.bf16 %v2420_v23, %v2419_v22  ;;  %v3572_v22 = vpack.c.bf16 %v1724_v20, %v1723_v19 }
 0x2fc   :  { %3495 = vmatprep.subr.bf16.mxu1 %v3494_v29  ;;  %v2452_v29 = vld [vmem:[%s5560_s4 + $0x3f8] sm:$0xff]  ;;  %v3544_v33 = vpack.c.bf16 %v2434_v26, %v2433_v25  ;;  %v2470_v16 = vld [vmem:[%s5561_s5 + $0x110] sm:$0xff]  ;;  %v1707_v23 = vld [vmem:[%s5561_s5 + $0x20] sm:$0xff] }
 0x2fd   :  { %3525 = vmatpush3.bf16.msra.mxu0 %v3524_v32  ;;  %v2404_v32 = vld [vmem:[%s5560_s4 + $0x278] sm:$0xff]  ;;  %v3546_v36 = vpack.c.bf16 %v2452_v29, %v2451_v28  ;;  %v2488_v25 = vld [vmem:[%s5561_s5 + $0x1a0] sm:$0xff]  ;;  %v2489_v26 = vld [vmem:[%s5561_s5 + $0x1a8] sm:$0xff] }
 0x2fe   :  { %3527 = vmatprep.subr.bf16.mxu0 %v3526_v35  ;;  %v2456_v35 = vld [vmem:[%s5557_s1 + $0x78] sm:$0xff]  ;;  %v3516_v39 = vpack.c.bf16 %v2404_v32, %v2403_v31  ;;  %v2473_v28 = vld [vmem:[%s5561_s5 + $0x128] sm:$0xff]  ;;  %v1725_v31 = vld [vmem:[%s5561_s5 + $0xb0] sm:$0xff] }
 0x2ff   :  { %3497 = vmatpush3.bf16.msra.mxu1 %v3496_v38  ;;  %v2436_v38 = vld [vmem:[%s5560_s4 + $0x378] sm:$0xff]  ;;  %v3550_v40 = vpack.c.bf16 %v2456_v35, %v2454_v34  ;;  %v1709_v35 = vld [vmem:[%s5561_s5 + $0x30] sm:$0xff] }
 0x300   :  { %3499 = vmatprep.subr.bf16.mxu1 %v3498_v41  ;;  %v2453_v41 = vld [vmem:[%s5557_s1 + $0x60] sm:$0xff]  ;;  %v3548_v43 = vpack.c.bf16 %v2436_v38, %v2435_v37  ;;  %v1726_v32 = vld [vmem:[%s5561_s5 + $0xb8] sm:$0xff]  ;;  %v2490_v38 = vld [vmem:[%s5561_s5 + $0x1b0] sm:$0xff] }
 0x301   :  { %3529 = vmatpush3.bf16.msra.mxu0 %v3528_v44  ;;  %v2458_v44 = vld [vmem:[%s5557_s1 + $0x88] sm:$0xff]  ;;  %v3552_v47 = vpack.c.bf16 %v2455_v42, %v2453_v41  ;;  %v3576_v34 = vpack.c.bf16 %v1726_v32, %v1725_v31  ;;  %v2474_v41 = vld [vmem:[%s5561_s5 + $0x130] sm:$0xff]  ;;  %v2475_v42 = vld [vmem:[%s5561_s5 + $0x138] sm:$0xff] }
 0x302   :  { %3531 = vmatprep.subr.bf16.mxu0 %v3530_v48  ;;  %v1429_v48 = vrot.slane %v4925_v3, 2  ;;  %v3554_v49 = vpack.c.bf16 %v2460_v45, %v2458_v44  ;;  %v1727_v44 = vld [vmem:[%s5561_s5 + $0xc0] sm:$0xff]  ;;  %v1728_v45 = vld [vmem:[%s5561_s5 + $0xc8] sm:$0xff]  ;;  %v1717_v20 = vld [vmem:[%s5561_s5 + $0x70] sm:$0xff] }
 0x303   :  { %3501 = vmatpush3.bf16.msra.mxu1 %v3500_v51  ;;  %v2459_v51 = vld [vmem:[%s5557_s1 + $0x90] sm:$0xff]  ;;  %v2548_v32 = vld [vmem:[%s5561_s5 + $0x380] sm:$0xff] }
 0x304   :  { %3503 = vmatprep.subr.bf16.mxu1 %v3502_v54  ;;  %v1536_v54 = vrot.slane %v4925_v3, 3  ;;  %v3556_v55 = vpack.c.bf16 %v2459_v51, %v2457_v50  ;;  %v1720_v3 = vld [vmem:[%s5561_s5 + $0x88] sm:$0xff]  ;;  %v2492_v51 = vld [vmem:[%s5561_s5 + $0x1c0] sm:$0xff] }
 0x305   :  { %3533 = vmatpush3.bf16.msra.mxu0 %v3532_v57  ;;  %v2461_v57 = vld [vmem:[%s5557_s1 + $0xa0] sm:$0xff]  ;;  %v3612_v53 = vpack.c.bf16 %v2493_v52, %v2492_v51 }
 0x306   :  { %3535 = vmatprep.subr.bf16.mxu0 %v3534_v61  ;;  %v3561_v60 = vpack.c.bf16 %v2463_v58, %v2461_v57  ;;  %v1703_v61 = vld [vmem:[%s5561_s5] sm:$0xff]  ;;  %v1729_v57 = vld [vmem:[%s5561_s5 + $0xd0] sm:$0xff]  ;;  %v1730_v58 = vld [vmem:[%s5561_s5 + $0xd8] sm:$0xff] }
 0x307   :  { %3505 = vmatpush3.bf16.msra.mxu1 %v3504_v0  ;;  %v3566_v0 = vpack.c.bf16 %v1704_v15, %v1703_v61  ;;  %v2495_v15 = vld [vmem:[%s5561_s5 + $0x1d8] sm:$0xff] }
 0x308   :  { %3507 = vmatprep.subr.bf16.mxu1 %v3506_v4  ;;  %v2469_v4 = vld [vmem:[%s5561_s5 + $0x108] sm:$0xff] }
 0x309   :  { %3537 = vmatpush3.bf16.msra.mxu0 %v3536_v8  ;;  %v3598_v46 = vpack.c.bf16 %v2469_v4, %v2468_v10  ;;  %v1722_v8 = vld [vmem:[%s5561_s5 + $0x98] sm:$0xff]  ;;  %v1732_v4 = vld [vmem:[%s5561_s5 + $0xe8] sm:$0xff] }
 0x30a   :  { %3539 = vmatprep.subr.bf16.mxu0 %v3538_v1  ;;  %v3568_v1 = vpack.c.bf16 %v1722_v8, %v1721_v5  ;;  %v1715_v5 = vld [vmem:[%s5561_s5 + $0x60] sm:$0xff] }
 0x30b   :  { %3509 = vmatpush3.bf16.msra.mxu1 %v3508_v14  ;;  %v2487_v14 = vld [vmem:[%s5561_s5 + $0x198] sm:$0xff] }
 0x30c   :  { %3511 = vmatprep.subr.bf16.mxu1 %v3510_v18  ;;  %v3600_v17 = vpack.c.bf16 %v2487_v14, %v2486_v13  ;;  %v2471_v18 = vld [vmem:[%s5561_s5 + $0x118] sm:$0xff]  ;;  %v2480_v13 = vld [vmem:[%s5561_s5 + $0x160] sm:$0xff]  ;;  %v2481_v14 = vld [vmem:[%s5561_s5 + $0x168] sm:$0xff] }
 0x30d   :  { %3541 = vmatpush3.bf16.msra.mxu0 %v3540_v21  ;;  %v3602_v21 = vpack.c.bf16 %v2471_v18, %v2470_v16  ;;  %v3622_v16 = vpack.c.bf16 %v2481_v14, %v2480_v13  ;;  %v1734_v18 = vld [vmem:[%s5561_s5 + $0xf8] sm:$0xff] }
 0x30e   :  { %3543 = vmatprep.subr.bf16.mxu0 %v3542_v24  ;;  %v1708_v24 = vld [vmem:[%s5561_s5 + $0x28] sm:$0xff]  ;;  %v2535_v13 = vld [vmem:[%s5561_s5 + $0x318] sm:$0xff] }
 0x30f   :  { %3513 = vmatpush3.bf16.msra.mxu1 %v3512_v27  ;;  %v2472_v27 = vld [vmem:[%s5561_s5 + $0x120] sm:$0xff]  ;;  %v3574_v29 = vpack.c.bf16 %v1708_v24, %v1707_v23  ;;  %v2498_v23 = vld [vmem:[%s5561_s5 + $0x1f0] sm:$0xff]  ;;  %v2499_v24 = vld [vmem:[%s5561_s5 + $0x1f8] sm:$0xff] }
 0x310   :  { %3515 = vmatprep.subr.bf16.mxu1 %v3514_v30  ;;  %v3604_v30 = vpack.c.bf16 %v2489_v26, %v2488_v25  ;;  %v3624_v25 = vpack.c.bf16 %v2499_v24, %v2498_v23  ;;  %v2482_v26 = vld [vmem:[%s5561_s5 + $0x170] sm:$0xff]  ;;  %v2523_v24 = vld [vmem:[%s5561_s5 + $0x2b8] sm:$0xff] }
 0x311   :  { %3545 = vmatpush3.bf16.msra.mxu0 %v3544_v33  ;;  %v3606_v33 = vpack.c.bf16 %v2473_v28, %v2472_v27  ;;  %v2483_v27 = vld [vmem:[%s5561_s5 + $0x178] sm:$0xff]  ;;  %v2522_v23 = vld [vmem:[%s5561_s5 + $0x2b0] sm:$0xff] }
 0x312   :  { %3547 = vmatprep.subr.bf16.mxu0 %v3546_v36  ;;  %v1710_v36 = vld [vmem:[%s5561_s5 + $0x38] sm:$0xff]  ;;  %v3626_v28 = vpack.c.bf16 %v2483_v27, %v2482_v26  ;;  %v2536_v26 = vld [vmem:[%s5561_s5 + $0x320] sm:$0xff]  ;;  %v2537_v27 = vld [vmem:[%s5561_s5 + $0x328] sm:$0xff] }
 0x313   :  { %3517 = vmatpush3.bf16.msra.mxu1 %v3516_v39  ;;  %v3578_v37 = vpack.c.bf16 %v1710_v36, %v1709_v35  ;;  %v2491_v39 = vld [vmem:[%s5561_s5 + $0x1b8] sm:$0xff]  ;;  %v1082_v36 = vld [vmem:[%s5562_s6] sm:$0x1] }
 0x314   :  { %3551 = vmatprep.subr.bf16.mxu1 %v3550_v40  ;;  %v3608_v40 = vpack.c.bf16 %v2491_v39, %v2490_v38 }
 0x315   :  { %3549 = vmatpush3.bf16.msra.mxu0 %v3548_v43  ;;  %v3610_v43 = vpack.c.bf16 %v2475_v42, %v2474_v41 }
 0x316   :  { %1498 = vmatmul.mubr.f32.vlgmr.msra.gmra.mrb[12].mxu1 %v1429_v48  ;;  %v1711_v48 = vld [vmem:[%s5561_s5 + $0x40] sm:$0xff] }
 0x317   :  { %3553 = vmatpush1.bf16.msra.mxu1 %v3552_v47  ;;  %1694 = vmatprep.mubr.f32.mxu1 %v3721_v7  ;;  %v1719_v7 = vld [vmem:[%s5561_s5 + $0x80] sm:$0xff]  ;;  %v3580_v47 = vpack.c.bf16 %v1728_v45, %v1727_v44 }
 0x318   :  { %1605 = vmatmul.mubr.f32.vlgmr.msra.gmra.mrb[14].mxu0 %v1536_v54  ;;  %3555 = vmatprep.subr.bf16.mxu1 %v3554_v49  ;;  %v3564_v63 = vpack.c.bf16 %v1720_v3, %v1719_v7  ;;  %v1712_v49 = vld [vmem:[%s5561_s5 + $0x48] sm:$0xff]  ;;  %v2476_v54 = vld [vmem:[%s5561_s5 + $0x140] sm:$0xff]  ;;  %v1713_v7 = vld [vmem:[%s5561_s5 + $0x50] sm:$0xff] }
 0x319   :  { %v3582_v50 = vpack.c.bf16 %v1712_v49, %v1711_v48  ;;  %v1714_v3 = vld [vmem:[%s5561_s5 + $0x58] sm:$0xff] }
 0x31a   :  { %3565 = vmatprep.subr.bf16.mxu0 %v3564_v63  ;;  %v3586_v61 = vpack.c.bf16 %v1714_v3, %v1713_v7  ;;  %v2494_v63 = vld [vmem:[%s5561_s5 + $0x1d0] sm:$0xff]  ;;  %v2533_v3 = vld [vmem:[%s5561_s5 + $0x308] sm:$0xff] }
 0x31b   :  { %3557 = vmatpush1.bf16.msra.mxu1 %v3556_v55  ;;  %3567 = vmatpush3.bf16.msra.mxu0 %v3566_v0  ;;  %v2477_v55 = vld [vmem:[%s5561_s5 + $0x148] sm:$0xff]  ;;  %v2479_v0 = vld [vmem:[%s5561_s5 + $0x158] sm:$0xff] }
 0x31c   :  { %3560 = vmatprep.subr.msk.bf16.mxu1 %vm3797_vm2, %v3558_v56  ;;  %3569 = vmatprep.subr.bf16.mxu0 %v3568_v1  ;;  %v3614_v56 = vpack.c.bf16 %v2477_v55, %v2476_v54  ;;  %v2497_v1 = vld [vmem:[%s5561_s5 + $0x1e8] sm:$0xff] }
 0x31f   :  { %3563 = vmatpush1.bf16.msk.msra.mxu1 %vm3797_vm2, %v3561_v60  ;;  %3571 = vmatpush3.bf16.msra.mxu0 %v3570_v12  ;;  %v3584_v60 = vpack.c.bf16 %v1730_v58, %v1729_v57  ;;  %v3620_v12 = vpack.c.bf16 %v2497_v1, %v2496_v11  ;;  %v2501_v57 = vld [vmem:[%s5561_s5 + $0x208] sm:$0xff] }
 0x320   :  { %3573 = vmatprep.subr.bf16.mxu0 %v3572_v22 }
 0x322   :  { %2467 = vmatmul.mubr.msk.f32.vlgmr.msra.gmra.mrb[14].mxu1 %vm47_vm3, %v4702_v6  ;;  %v2484_v6 = vld [vmem:[%s5561_s5 + $0x180] sm:$0xff] }
 0x323   :  { %v3596_v2 = vpack.c.bf16 %v2485_v62, %v2484_v6  ;;  %3575 = vmatpush3.bf16.msra.mxu0 %v3574_v29  ;;  %v3616_v6 = vpack.c.bf16 %v2495_v15, %v2494_v63  ;;  %v2478_v62 = vld [vmem:[%s5561_s5 + $0x150] sm:$0xff]  ;;  %v2516_v29 = vld [vmem:[%s5561_s5 + $0x280] sm:$0xff]  ;;  %v2519_v63 = vld [vmem:[%s5561_s5 + $0x298] sm:$0xff] }
 0x324   :  { %3577 = vmatprep.subr.bf16.mxu0 %v3576_v34  ;;  %v3618_v10 = vpack.c.bf16 %v2479_v0, %v2478_v62  ;;  %v2551_v62 = vld [vmem:[%s5561_s5 + $0x398] sm:$0xff]  ;;  %v2502_v0 = vld [vmem:[%s5561_s5 + $0x210] sm:$0xff] }
 0x325   :  { %3597 = vmatprep.subr.bf16.mxu1 %v3596_v2  ;;  %v1731_v2 = vld [vmem:[%s5561_s5 + $0xe0] sm:$0xff] }
 0x326   :  { %3599 = vmatpush3.bf16.msra.mxu1 %v3598_v46  ;;  %v1716_v46 = vld [vmem:[%s5561_s5 + $0x68] sm:$0xff]  ;;  %v3588_v8 = vpack.c.bf16 %v1732_v4, %v1731_v2  ;;  %v2503_v2 = vld [vmem:[%s5561_s5 + $0x218] sm:$0xff] }
 0x327   :  { %3601 = vmatprep.subr.bf16.mxu1 %v3600_v17  ;;  %3579 = vmatpush3.bf16.msra.mxu0 %v3578_v37  ;;  %v3590_v9 = vpack.c.bf16 %v1716_v46, %v1715_v5  ;;  %v1733_v17 = vld [vmem:[%s5561_s5 + $0xf0] sm:$0xff]  ;;  %v3634_v14 = vpack.c.bf16 %v2503_v2, %v2502_v0  ;;  %v2560_v0 = vld [vmem:[%s5561_s5 + $0x3e0] sm:$0xff]  ;;  %v2561_v2 = vld [vmem:[%s5561_s5 + $0x3e8] sm:$0xff] }
 0x328   :  { %3581 = vmatprep.subr.bf16.mxu0 %v3580_v47  ;;  %v3592_v19 = vpack.c.bf16 %v1734_v18, %v1733_v17  ;;  %v2553_v17 = vld [vmem:[%s5561_s5 + $0x3a8] sm:$0xff] }
 0x32a   :  { %3603 = vmatpush3.bf16.msra.mxu1 %v3602_v21  ;;  %v1718_v21 = vld [vmem:[%s5561_s5 + $0x78] sm:$0xff] }
 0x32b   :  { %3605 = vmatprep.subr.bf16.mxu1 %v3604_v30  ;;  %3583 = vmatpush3.bf16.msra.mxu0 %v3582_v50  ;;  %v3594_v22 = vpack.c.bf16 %v1718_v21, %v1717_v20  ;;  %v2517_v30 = vld [vmem:[%s5561_s5 + $0x288] sm:$0xff]  ;;  %v2504_v20 = vld [vmem:[%s5561_s5 + $0x220] sm:$0xff] }
 0x32c   :  { %3585 = vmatprep.subr.bf16.mxu0 %v3584_v60  ;;  %v3628_v31 = vpack.c.bf16 %v2517_v30, %v2516_v29  ;;  %v2532_v60 = vld [vmem:[%s5561_s5 + $0x300] sm:$0xff]  ;;  %v2505_v21 = vld [vmem:[%s5561_s5 + $0x228] sm:$0xff]  ;;  %v2554_v29 = vld [vmem:[%s5561_s5 + $0x3b0] sm:$0xff] }
 0x32d   :  { %v3662_v5 = vpack.c.bf16 %v2533_v3, %v2532_v60  ;;  %v2555_v30 = vld [vmem:[%s5561_s5 + $0x3b8] sm:$0xff] }
 0x32e   :  { %3607 = vmatpush3.bf16.msra.mxu1 %v3606_v33  ;;  %v2549_v33 = vld [vmem:[%s5561_s5 + $0x388] sm:$0xff]  ;;  %v2511_v60 = vld [vmem:[%s5561_s5 + $0x258] sm:$0xff] }
 0x32f   :  { %3609 = vmatprep.subr.bf16.mxu1 %v3608_v40  ;;  %3587 = vmatpush3.bf16.msra.mxu0 %v3586_v61  ;;  %v3660_v34 = vpack.c.bf16 %v2549_v33, %v2548_v32  ;;  %v2518_v61 = vld [vmem:[%s5561_s5 + $0x290] sm:$0xff]  ;;  %v2507_v33 = vld [vmem:[%s5561_s5 + $0x238] sm:$0xff] }
 0x330   :  { %3589 = vmatprep.subr.bf16.mxu0 %v3588_v8  ;;  %v3632_v46 = vpack.c.bf16 %v2519_v63, %v2518_v61  ;;  %v2520_v8 = vld [vmem:[%s5561_s5 + $0x2a0] sm:$0xff]  ;;  %v2506_v32 = vld [vmem:[%s5561_s5 + $0x230] sm:$0xff]  ;;  %v2529_v63 = vld [vmem:[%s5561_s5 + $0x2e8] sm:$0xff] }
 0x331   :  { %v2528_v61 = vld [vmem:[%s5561_s5 + $0x2e0] sm:$0xff] }
 0x332   :  { %3611 = vmatpush3.bf16.msra.mxu1 %v3610_v43 }
 0x333   :  { %3613 = vmatprep.subr.bf16.mxu1 %v3612_v53  ;;  %3591 = vmatpush3.bf16.msra.mxu0 %v3590_v9  ;;  %v2521_v9 = vld [vmem:[%s5561_s5 + $0x2a8] sm:$0xff] }
 0x334   :  { %3593 = vmatprep.subr.bf16.mxu0 %v3592_v19  ;;  %v3636_v19 = vpack.c.bf16 %v2521_v9, %v2520_v8  ;;  %v2530_v8 = vld [vmem:[%s5561_s5 + $0x2f0] sm:$0xff]  ;;  %v2531_v9 = vld [vmem:[%s5561_s5 + $0x2f8] sm:$0xff] }
 0x336   :  { %3615 = vmatpush3.bf16.msra.mxu1 %v3614_v56  ;;  %v2500_v56 = vld [vmem:[%s5561_s5 + $0x200] sm:$0xff] }
 0x337   :  { %3617 = vmatprep.subr.bf16.mxu1 %v3616_v6  ;;  %3595 = vmatpush3.bf16.msra.mxu0 %v3594_v22  ;;  %v2550_v6 = vld [vmem:[%s5561_s5 + $0x390] sm:$0xff] }
 0x338   :  { %3629 = vmatprep.subr.bf16.mxu0 %v3628_v31  ;;  %v3664_v1 = vpack.c.bf16 %v2551_v62, %v2550_v6  ;;  %v3640_v31 = vpack.c.bf16 %v2523_v24, %v2522_v23  ;;  %v2543_v6 = vld [vmem:[%s5561_s5 + $0x358] sm:$0xff] }
 0x339   :  { %v2547_v23 = vld [vmem:[%s5561_s5 + $0x378] sm:$0xff] }
 0x33a   :  { %3619 = vmatpush3.bf16.msra.mxu1 %v3618_v10 }
 0x33b   :  { %3621 = vmatprep.subr.bf16.mxu1 %v3620_v12  ;;  %v2534_v12 = vld [vmem:[%s5561_s5 + $0x310] sm:$0xff] }
 0x33c   :  { %v3666_v22 = vpack.c.bf16 %v2535_v13, %v2534_v12  ;;  %v2545_v12 = vld [vmem:[%s5561_s5 + $0x368] sm:$0xff] }
 0x33e   :  { %3623 = vmatpush3.bf16.msra.mxu1 %v3622_v16  ;;  %v2552_v16 = vld [vmem:[%s5561_s5 + $0x3a0] sm:$0xff] }
 0x33f   :  { %3625 = vmatprep.subr.bf16.mxu1 %v3624_v25  ;;  %v3668_v25 = vpack.c.bf16 %v2553_v17, %v2552_v16  ;;  %v2563_v16 = vld [vmem:[%s5561_s5 + $0x3f8] sm:$0xff]  ;;  %v3656_v17 = vpack.c.bf16 %v2531_v9, %v2530_v8 }
 0x342   :  { %3627 = vmatpush3.bf16.msra.mxu1 %v3626_v28  ;;  %v3638_v28 = vpack.c.bf16 %v2505_v21, %v2504_v20 }
 0x343   :  { %3661 = vmatprep.subr.bf16.mxu1 %v3660_v34  ;;  %v3670_v34 = vpack.c.bf16 %v2537_v27, %v2536_v26 }
 0x3c9   :  { %v2876_v35 = vpop.f32.mrb[10].mxu1 }
 0x3ca   :  { %v2877_v37 = vpop.f32.mrb[11].mxu1 }
 0x3cb   :  { %v2878_v38 = vadd.f32 %v2877_v37, %v2876_v35  ;;  %v2911_v39 = vpop.f32.mrb[12].mxu0  ;;  %v2524_v35 = vld [vmem:[%s5561_s5 + $0x2c0] sm:$0xff]  ;;  %v3672_v37 = vpack.c.bf16 %v2555_v30, %v2554_v29 }
 0x3cc   :  { %v2912_v40 = vpop.f32.mrb[13].mxu0 }
 0x3cd   :  { %v1287_v41 = vadd.f32 %v2878_v38, %v1082_v36  ;;  %v2913_v42 = vadd.f32 %v2912_v40, %v2911_v39  ;;  %v2525_v36 = vld [vmem:[%s5561_s5 + $0x2c8] sm:$0xff]  ;;  %v2538_v38 = vld [vmem:[%s5561_s5 + $0x330] sm:$0xff]  ;;  %v2539_v39 = vld [vmem:[%s5561_s5 + $0x338] sm:$0xff]  ;;  %v3642_v40 = vpack.c.bf16 %v2507_v33, %v2506_v32 }
 0x3cf   :  { %v1396_v43 = vadd.f32 %v2913_v42, %v1287_v41  ;;  %v2556_v41 = vld [vmem:[%s5561_s5 + $0x3c0] sm:$0xff]  ;;  %v2557_v42 = vld [vmem:[%s5561_s5 + $0x3c8] sm:$0xff] }
 0x3e9   :  { %v2946_v44 = vpop.f32.mrb[12].mxu1 }
 0x3ea   :  { %v2947_v45 = vpop.f32.mrb[13].mxu1 }
 0x3eb   :  { %v2948_v47 = vadd.f32 %v2947_v45, %v2946_v44  ;;  %v2981_v48 = vpop.f32.mrb[14].mxu0  ;;  %v2508_v44 = vld [vmem:[%s5561_s5 + $0x240] sm:$0xff]  ;;  %v2509_v45 = vld [vmem:[%s5561_s5 + $0x248] sm:$0xff] }
 0x3ec   :  { %v2982_v49 = vpop.f32.mrb[15].mxu0 }
 0x3ed   :  { %v1503_v50 = vadd.f32 %v2948_v47, %v1396_v43  ;;  %v2983_v51 = vadd.f32 %v2982_v49, %v2981_v48  ;;  %v3644_v43 = vpack.c.bf16 %v2525_v36, %v2524_v35  ;;  %v3674_v47 = vpack.c.bf16 %v2539_v39, %v2538_v38  ;;  %v2526_v48 = vld [vmem:[%s5561_s5 + $0x2d0] sm:$0xff]  ;;  %v2527_v49 = vld [vmem:[%s5561_s5 + $0x2d8] sm:$0xff] }
 0x3ef   :  { %v5352_v52 = vadd.f32 %v2983_v51, %v1503_v50  ;;  %v3676_v50 = vpack.c.bf16 %v2557_v42, %v2556_v41  ;;  %v2540_v51 = vld [vmem:[%s5561_s5 + $0x340] sm:$0xff] }
 0x3f5   :  { %v1696_v53 = vpop.f32.mrb[14].mxu1 }
 0x3f6   :  { %v1697_v54 = vadd.f32 %v1696_v53, %v4912_v59  ;;  %v1698_v55 = vpop.f32.mrb[15].mxu1  ;;  %v2541_v53 = vld [vmem:[%s5561_s5 + $0x348] sm:$0xff] }
 0x3f7   :  { %v1699_v58 = vadd.f32 %v1698_v55, %v4912_v59  ;;  %v3630_v59 = vpack.c.bf16 %v2501_v57, %v2500_v56  ;;  %v2558_v55 = vld [vmem:[%s5561_s5 + $0x3d0] sm:$0xff]  ;;  %v2559_v56 = vld [vmem:[%s5561_s5 + $0x3d8] sm:$0xff]  ;;  %v3648_v57 = vpack.c.bf16 %v2527_v49, %v2526_v48  ;;  %v3678_v3 = vpack.c.bf16 %v2541_v53, %v2540_v51 }
 0x3f8   :  { %v5365_v7 = vmax.f32 %v1697_v54, 0.0  ;;  %v3646_v54 = vpack.c.bf16 %v2509_v45, %v2508_v44 }
 0x3f9   :  { %v1702_v15 = vmax.f32 %v1699_v58, 0.0  ;;  %v2510_v58 = vld [vmem:[%s5561_s5 + $0x250] sm:$0xff] }
 0x3fa   :  { %v1840_v11 = vrot.slane %v5365_v7, 1  ;;  %v3650_v62 = vpack.c.bf16 %v2511_v60, %v2510_v58  ;;  %v1947_v26 = vrot.slane %v5365_v7, 2  ;;  %v2054_v27 = vrot.slane %v5365_v7, 3 }
 0x3fb   :  { %1799 = vmatprep.mubr.f32.mxu0 %v1702_v15  ;;  %v1841_v10 = vrot.slane %v1702_v15, 1  ;;  %v1948_v4 = vrot.slane %v1702_v15, 2  ;;  %v2055_v18 = vrot.slane %v1702_v15, 3  ;;  %v3680_v15 = vpack.c.bf16 %v2559_v56, %v2558_v55 }
 0x3fc   :  { %1800 = vmatmul.mubr.f32.vlgmr.msra.gmra.mrb[16].mxu0 %v5365_v7 }
 0x3fd   :  { %3631 = vmatpush3.bf16.msra.mxu0 %v3630_v59  ;;  %1908 = vmatprep.mubr.f32.mxu1 %v1841_v10  ;;  %v2542_v59 = vld [vmem:[%s5561_s5 + $0x350] sm:$0xff]  ;;  %v3652_v10 = vpack.c.bf16 %v2529_v63, %v2528_v61 }
 0x3fe   :  { %2015 = vmatprep.mubr.f32.mxu0 %v1948_v4  ;;  %1909 = vmatmul.mubr.f32.vlgmr.msra.gmra.mrb[16].mxu1 %v1840_v11  ;;  %v2512_v4 = vld [vmem:[%s5561_s5 + $0x260] sm:$0xff]  ;;  %v3684_v11 = vpack.c.bf16 %v2561_v2, %v2560_v0 }
 0x3ff   :  { %3663 = vmatpush3.bf16.msra.mxu1 %v3662_v5  ;;  %3633 = vmatprep.subr.bf16.mxu0 %v3632_v46  ;;  %v2513_v5 = vld [vmem:[%s5561_s5 + $0x268] sm:$0xff]  ;;  %v3682_v46 = vpack.c.bf16 %v2543_v6, %v2542_v59 }
 0x400   :  { %2122 = vmatprep.mubr.f32.mxu1 %v2055_v18  ;;  %3665 = vmatprep.subr.bf16.mxu1 %v3664_v1  ;;  %v2544_v1 = vld [vmem:[%s5561_s5 + $0x360] sm:$0xff]  ;;  %v3654_v13 = vpack.c.bf16 %v2513_v5, %v2512_v4  ;;  %v2514_v18 = vld [vmem:[%s5561_s5 + $0x270] sm:$0xff] }
 0x401   :  { %3635 = vmatpush3.bf16.msra.mxu0 %v3634_v14  ;;  %v2562_v14 = vld [vmem:[%s5561_s5 + $0x3f0] sm:$0xff]  ;;  %v3686_v20 = vpack.c.bf16 %v2545_v12, %v2544_v1 }
 0x402   :  { %3637 = vmatprep.subr.bf16.mxu0 %v3636_v19  ;;  %v2515_v19 = vld [vmem:[%s5561_s5 + $0x278] sm:$0xff]  ;;  %v3688_v21 = vpack.c.bf16 %v2563_v16, %v2562_v14 }
 0x403   :  { %3667 = vmatpush3.bf16.msra.mxu1 %v3666_v22  ;;  %v2546_v22 = vld [vmem:[%s5561_s5 + $0x370] sm:$0xff]  ;;  %v3658_v24 = vpack.c.bf16 %v2515_v19, %v2514_v18  ;;  %s3724_s5 = smov [#allocation2]  }
 0x404   :  { %3669 = vmatprep.subr.bf16.mxu1 %v3668_v25  ;;  %v3690_v25 = vpack.c.bf16 %v2547_v23, %v2546_v22  ;;  %s2136_s14 = sshll.u32 %s3724_s5, 4  ;;  %s2137_s14 = int_to_ptr.vmem [resolvable:$true] %s2136_s14 }
 0x405   :  { %3639 = vmatpush3.bf16.msra.mxu0 %v3638_v28  ;;  %s3697_s15 = scalar_lea.vmem %s2137_s14, 32  ;;  %p3702_p1 = scmp.lt.s32.totalorder %s2137_s14, %s2137_s14 }
 0x406   :  { %3641 = vmatprep.subr.bf16.mxu0 %v3640_v31  ;;  %p3698_p0 = scmp.ne.s32.totalorder %s2137_s14, %s3697_s15  ;;  %p3703_p2 = scmp.lt.s32.totalorder %s3697_s15, %s3697_s15 }
 0x407   :  { %3671 = vmatpush3.bf16.msra.mxu1 %v3670_v34 }
 0x408   :  { %3673 = vmatprep.subr.bf16.mxu1 %v3672_v37  ;;  %p3704_p3 = por %p3703_p2, %p3702_p1 }
 0x409   :  { %3643 = vmatpush3.bf16.msra.mxu0 %v3642_v40 }
 0x40a   :  { %3645 = vmatprep.subr.bf16.mxu0 %v3644_v43  ;;  %p3705_p4 = pnand %p3704_p3, %p3698_p0 }
 0x40b   :  { %3675 = vmatpush3.bf16.msra.mxu1 %v3674_v47 }
 0x40c   :  { %3677 = vmatprep.subr.bf16.mxu1 %v3676_v50 }
 0x40d   :  { %3647 = vmatpush3.bf16.msra.mxu0 %v3646_v54 }
 0x40e   :  { %3649 = vmatprep.subr.bf16.mxu0 %v3648_v57 }
 0x40f   :  { %3679 = vmatpush3.bf16.msra.mxu1 %v3678_v3 }
 0x410   :  { %3681 = vmatprep.subr.bf16.mxu1 %v3680_v15 }
 0x411   :  { %3651 = vmatpush3.bf16.msra.mxu0 %v3650_v62 }
 0x412   :  { %3653 = vmatprep.subr.bf16.mxu0 %v3652_v10 }
 0x413   :  { %3683 = vmatpush3.bf16.msra.mxu1 %v3682_v46 }
 0x414   :  { %3685 = vmatprep.subr.bf16.mxu1 %v3684_v11 }
 0x415   :  { %3655 = vmatpush3.bf16.msra.mxu0 %v3654_v13 }
 0x416   :  { %3657 = vmatprep.subr.bf16.mxu0 %v3656_v17 }
 0x417   :  { %3687 = vmatpush3.bf16.msra.mxu1 %v3686_v20 }
 0x418   :  { %3689 = vmatprep.subr.bf16.mxu1 %v3688_v21 }
 0x419   :  { %3659 = vmatpush3.bf16.msra.mxu0 %v3658_v24 }
 0x41b   :  { %3691 = vmatpush3.bf16.msra.mxu1 %v3690_v25 }
 0x41c   :  { %2016 = vmatmul.mubr.f32.vlgmr.msra.gmra.mrb[18].mxu0 %v1947_v26 }
 0x41e   :  { %2123 = vmatmul.mubr.f32.vlgmr.msra.gmra.mrb[18].mxu1 %v2054_v27 }
 0x4cf   :  { %v3016_v28 = vpop.f32.mrb[16].mxu0 }
 0x4d0   :  { %v3017_v29 = vpop.f32.mrb[17].mxu0 }
 0x4d1   :  { %v3018_v30 = vadd.f32 %v3017_v29, %v3016_v28  ;;  %v3051_v31 = vpop.f32.mrb[16].mxu1 }
 0x4d2   :  { %v3052_v32 = vpop.f32.mrb[17].mxu1 }
 0x4d3   :  { %v1805_v33 = vadd.f32 %v3018_v30, %v5352_v52  ;;  %v3053_v34 = vadd.f32 %v3052_v32, %v3051_v31 }
 0x4d5   :  { %v1914_v35 = vadd.f32 %v3053_v34, %v1805_v33 }
 0x4ef   :  { %v3086_v36 = vpop.f32.mrb[18].mxu0 }
 0x4f0   :  { %v3087_v37 = vpop.f32.mrb[19].mxu0 }
 0x4f1   :  { %v3088_v38 = vadd.f32 %v3087_v37, %v3086_v36  ;;  %v3121_v39 = vpop.f32.mrb[18].mxu1 }
 0x4f2   :  { %v3122_v40 = vpop.f32.mrb[19].mxu1 }
 0x4f3   :  { %v2021_v41 = vadd.f32 %v3088_v38, %v1914_v35  ;;  %v3123_v42 = vadd.f32 %v3122_v40, %v3121_v39 }
 0x4f5   :  { %v2128_v7 = vadd.f32 %v3123_v42, %v2021_v41 }
 0x4f7   :  { %2129 = vst.msk [vmem:[#allocation2 + $0x1] sm:$0x1] %vm1080_vm4, %v2128_v7 }
 0x4f8   :  { %3708 = shalt.err (!%p3705_p4)
}
 0x4f9   :  { %s3709_s16 = scalar_lea.hbm %s5563_s7, 32 }
 0x4fa   :  { %p3710_p5 = scmp.ne.s32.totalorder %s5563_s7, %s3709_s16  ;;  %p3713_p6 = scmp.lt.u32.totalorder %s3709_s16, %s5563_s7 }
 0x4fc   :  { %p3715_p7 = pnand %p3713_p6, %p3710_p5 }
 0x4fe   :  { %3718 = shalt.err (!%p3715_p7)
}
 0x4ff   :  { %2139 = dma.vmem_to_hbm [thread:$0]  %s2137_s14, 32, %s5563_s7, [#allocation3]  }
 0x500   :  { %3719 = dma.done.wait [#allocation3], 32  }
 0x501   :  { %3720 = vsyncadd [#allocation3], 4294967264 }
 0x502   :  { %2143 = vsyncpa [#allocation3], 1 }

</bundles_post_ra>
